<compile_context>
chip_gen: v7x
topology: tpu7x:2x2x1
jax: 0.10.0
libtpu: 0.0.40
codegen_flags: <defaults>
</compile_context>

<pallas_src>
import functools
import numpy as np
import jax
import jax.numpy as jnp
from jax.experimental import pallas as pl
from jax.experimental.pallas import tpu as pltpu

_LN_EPS = 1e-5
_SQRT_2_OVER_PI = float(np.sqrt(2.0 / np.pi))
_VMEM_LIMIT_BYTES = 48 * 1024 * 1024          # safe on v5e/v6e/v7x
_VMEM_BLOCK_BUDGET = 24 * 1024 * 1024         # tiles + headroom for temps


def _ape_kernel(coords_ref, center_ref, params_ref, x_ref, o_ref):
    # coords_ref: (1, s_blk, N, 3)  raw (uncentred) periodic-image coordinates
    # center_ref: (1, 1, 3)         central-atom coordinate of this molecule
    # params_ref: (6, D)            rows: W[:,0], W[:,1], W[:,2], bias, gamma, beta
    # x_ref/o_ref: (1, s_blk, N, D)
    w0 = params_ref[0:1, :]
    w1 = params_ref[1:2, :]
    w2 = params_ref[2:3, :]
    bias = params_ref[3:4, :]
    gamma = params_ref[4:5, :]
    beta = params_ref[5:6, :]

    # Fused center subtraction (no rel materialization in HBM).
    rel = coords_ref[...] - center_ref[...]                     # (1, s, N, 3)

    # Linear(3 -> D) as three VPU broadcast-FMAs (no MXU, no K padding).
    h = (rel[..., 0:1] * w0 + rel[..., 1:2] * w1 + rel[..., 2:3] * w2) + bias

    # gelu (tanh approximation) — tanh goes to the EUP slot.
    h3 = h * h * h
    h = 0.5 * h * (1.0 + jnp.tanh(_SQRT_2_OVER_PI * (h + 0.044715 * h3)))

    # Residual add (dropout = identity in eval mode) + LayerNorm over d_model.
    z = x_ref[...] + h
    mean = jnp.mean(z, axis=-1, keepdims=True)
    zc = z - mean
    var = jnp.mean(zc * zc, axis=-1, keepdims=True)
    inv = jax.lax.rsqrt(var + _LN_EPS)
    o_ref[...] = zc * inv * gamma + beta


def _pick_s_blk(B, S, N, D):
    """Largest divisor of S whose double-buffered tiles fit the VMEM budget,
    while keeping at least 2 grid steps (v7x megacore)."""
    n_sub = ((N + 7) // 8) * 8            # sublane padding
    d_ln = ((D + 127) // 128) * 128       # lane padding of the d_model axis
    c_ln = 128                            # lane padding of the 3-wide coord axis

    def est_bytes(s_blk):
        x_blk = s_blk * n_sub * d_ln * 4
        c_blk = s_blk * n_sub * c_ln * 4
        # double-buffered coords + x-in + out, plus ~6 full-size temporaries
        return 2 * (c_blk + 2 * x_blk) + 6 * x_blk

    divs = [d for d in range(1, S + 1) if S % d == 0]
    cands = [d for d in divs if est_bytes(d) <= _VMEM_BLOCK_BUDGET] or [divs[0]]
    s_blk = max(cands)
    if B * (S // s_blk) < 2:              # keep >= 2 grid steps for v7x's 2 TCs
        smaller = [d for d in cands if d < s_blk]
        if smaller:
            s_blk = max(smaller)
    return s_blk


@functools.partial(jax.jit, static_argnames=("central_atom_index", "s_blk"))
def atom_positional_encoding(x, padded_coords, params, *, central_atom_index=0,
                             s_blk=None):
    """x: (B, 27, N, D) f32, padded_coords: (B, 27, N, 3)."""
    B, S, N, D = x.shape
    if s_blk is None:
        s_blk = _pick_s_blk(B, S, N, D)
    assert S % s_blk == 0

    xf = x.astype(jnp.float32)
    coords = padded_coords.astype(jnp.float32)
    centers = coords[:, 0, central_atom_index, :].reshape(B, 1, 3)   # tiny slice

    w, b, gamma, beta = params["w"], params["b"], params["gamma"], params["beta"]
    packed = jnp.concatenate(
        [w.T.astype(jnp.float32),                 # rows 0..2: W[:, k]
         b.reshape(1, D).astype(jnp.float32),     # row 3
         gamma.reshape(1, D).astype(jnp.float32), # row 4
         beta.reshape(1, D).astype(jnp.float32)], # row 5
        axis=0)                                   # (6, D)

    n_out = B * S * N * D
    cost = pl.CostEstimate(
        flops=26 * n_out,
        transcendentals=n_out + B * S * N,            # tanh per elem + rsqrt per row
        bytes_accessed=(B * S * N * 3 + B * 3 + 6 * D + 2 * n_out) * 4,
    )

    grid = (B, S // s_blk)
    out = pl.pallas_call(
        _ape_kernel,
        out_shape=jax.ShapeDtypeStruct((B, S, N, D), jnp.float32),
        grid_spec=pltpu.PrefetchScalarGridSpec(
            num_scalar_prefetch=0,
            grid=grid,
            in_specs=[
                pl.BlockSpec((1, s_blk, N, 3), lambda bb, j: (bb, j, 0, 0)),  # coords
                pl.BlockSpec((1, 1, 3),       lambda bb, j: (bb, 0, 0)),      # centers
                pl.BlockSpec((6, D),          lambda bb, j: (0, 0)),          # params
                pl.BlockSpec((1, s_blk, N, D), lambda bb, j: (bb, j, 0, 0)),  # x
            ],
            out_specs=pl.BlockSpec((1, s_blk, N, D), lambda bb, j: (bb, j, 0, 0)),
        ),
        compiler_params=pltpu.CompilerParams(
            dimension_semantics=("parallel", "parallel"),
            vmem_limit_bytes=_VMEM_LIMIT_BYTES),
        cost_estimate=cost,
    )(coords, centers, packed, xf)
    return out


def _reference(x, padded_coords, params, central_atom_index=0):
    """Pure-JAX reference mirroring the PyTorch forward (eval mode)."""
    w, b, gamma, beta = params["w"], params["b"], params["gamma"], params["beta"]
    center = padded_coords[:, 0, central_atom_index, :]
    rel = (padded_coords - center[:, None, None, :]).astype(jnp.float32)
    h = rel @ w.T + b
    h = 0.5 * h * (1.0 + jnp.tanh(_SQRT_2_OVER_PI * (h + 0.044715 * h ** 3)))
    z = x + h
    mean = jnp.mean(z, axis=-1, keepdims=True)
    var = jnp.mean((z - mean) ** 2, axis=-1, keepdims=True)
    return (z - mean) * jax.lax.rsqrt(var + _LN_EPS) * gamma + beta


if __name__ == "__main__":
    B, S, N, D = 2, 27, 8, 32   # num_mol, 27 periodic images, max_num_atom, d_model
    key = jax.random.PRNGKey(0)
    k1, k2, k3, k4 = jax.random.split(key, 4)

    x = jax.random.normal(k1, (B, S, N, D), dtype=jnp.float32)
    padded_coords = jax.random.normal(k2, (B, S, N, 3), dtype=jnp.float32) * 2.0

    # deterministic parameter init (Linear(3, D) + LayerNorm(D))
    params = {
        "w": jax.random.normal(k3, (D, 3), dtype=jnp.float32) * (1.0 / np.sqrt(3.0)),
        "b": jax.random.normal(k4, (D,), dtype=jnp.float32) * 0.1,
        "gamma": jnp.ones((D,), dtype=jnp.float32),
        "beta": jnp.zeros((D,), dtype=jnp.float32),
    }

    out = atom_positional_encoding(x, padded_coords, params, central_atom_index=0)
    out = jax.block_until_ready(out)

    ref = _reference(x, padded_coords, params, central_atom_index=0)
    assert out.shape == (B, S, N, D)
    np.testing.assert_allclose(np.asarray(out), np.asarray(ref), rtol=1e-5, atol=1e-5)

    print("KERNEL_OK")
</pallas_src>

<mosaic_0001>
module attributes {stable_mosaic.version = 11 : i64} {
  func.func @_ape_kernel(%arg0: i32, %arg1: i32, %arg2: memref<1x27x8x3xf32, #tpu.memory_space<vmem>>, %arg3: memref<1x1x3xf32, #tpu.memory_space<vmem>>, %arg4: memref<6x32xf32, #tpu.memory_space<vmem>>, %arg5: memref<1x27x8x32xf32, #tpu.memory_space<vmem>>, %arg6: memref<1x27x8x32xf32, #tpu.memory_space<vmem>>) attributes {dimension_semantics = [#tpu.dimension_semantics<parallel>, #tpu.dimension_semantics<parallel>], iteration_bounds = array<i64: 2, 1>, scalar_prefetch = 0 : i64, scratch_operands = 0 : i64, tpu.core_type = #tpu.core_type<tc>, window_params = [{transform_indices = @transform_0, window_bounds = array<i64: 1, 27, 8, 3>}, {transform_indices = @transform_1, window_bounds = array<i64: 1, 1, 3>}, {pipeline_mode = #tpu.pipeline_mode<synchronous>, transform_indices = @transform_2, window_bounds = array<i64: 6, 32>}, {transform_indices = @transform_3, window_bounds = array<i64: 1, 27, 8, 32>}, {transform_indices = @transform_4, window_bounds = array<i64: 1, 27, 8, 32>}]} {
    %c0 = arith.constant 0 : index
    %c0_0 = arith.constant 0 : index
    %0 = vector.load %arg4[%c0, %c0_0] : memref<6x32xf32, #tpu.memory_space<vmem>>, vector<1x32xf32>
    %c1 = arith.constant 1 : index
    %c0_1 = arith.constant 0 : index
    %1 = vector.load %arg4[%c1, %c0_1] : memref<6x32xf32, #tpu.memory_space<vmem>>, vector<1x32xf32>
    %c2 = arith.constant 2 : index
    %c0_2 = arith.constant 0 : index
    %2 = vector.load %arg4[%c2, %c0_2] : memref<6x32xf32, #tpu.memory_space<vmem>>, vector<1x32xf32>
    %c3 = arith.constant 3 : index
    %c0_3 = arith.constant 0 : index
    %3 = vector.load %arg4[%c3, %c0_3] : memref<6x32xf32, #tpu.memory_space<vmem>>, vector<1x32xf32>
    %c4 = arith.constant 4 : index
    %c0_4 = arith.constant 0 : index
    %4 = vector.load %arg4[%c4, %c0_4] : memref<6x32xf32, #tpu.memory_space<vmem>>, vector<1x32xf32>
    %c5 = arith.constant 5 : index
    %c0_5 = arith.constant 0 : index
    %5 = vector.load %arg4[%c5, %c0_5] : memref<6x32xf32, #tpu.memory_space<vmem>>, vector<1x32xf32>
    %c0_6 = arith.constant 0 : index
    %c0_7 = arith.constant 0 : index
    %c0_8 = arith.constant 0 : index
    %c0_9 = arith.constant 0 : index
    %6 = vector.load %arg2[%c0_6, %c0_7, %c0_8, %c0_9] : memref<1x27x8x3xf32, #tpu.memory_space<vmem>>, vector<1x27x8x3xf32>
    %c0_10 = arith.constant 0 : index
    %c0_11 = arith.constant 0 : index
    %c0_12 = arith.constant 0 : index
    %7 = vector.load %arg3[%c0_10, %c0_11, %c0_12] : memref<1x1x3xf32, #tpu.memory_space<vmem>>, vector<1x1x3xf32>
    %8 = vector.shape_cast %7 : vector<1x1x3xf32> to vector<1x1x1x3xf32>
    %9 = vector.broadcast %8 : vector<1x1x1x3xf32> to vector<1x27x8x3xf32>
    %10 = arith.subf %6, %9 : vector<1x27x8x3xf32>
    %11 = vector.extract_strided_slice %10 {offsets = [0, 0, 0, 0], sizes = [1, 27, 8, 1], strides = [1, 1, 1, 1]} : vector<1x27x8x3xf32> to vector<1x27x8x1xf32>
    %12 = vector.shape_cast %0 : vector<1x32xf32> to vector<1x1x1x32xf32>
    %13 = vector.broadcast %11 : vector<1x27x8x1xf32> to vector<1x27x8x32xf32>
    %14 = vector.broadcast %12 : vector<1x1x1x32xf32> to vector<1x27x8x32xf32>
    %15 = arith.mulf %13, %14 : vector<1x27x8x32xf32>
    %16 = vector.extract_strided_slice %10 {offsets = [0, 0, 0, 1], sizes = [1, 27, 8, 1], strides = [1, 1, 1, 1]} : vector<1x27x8x3xf32> to vector<1x27x8x1xf32>
    %17 = vector.shape_cast %1 : vector<1x32xf32> to vector<1x1x1x32xf32>
    %18 = vector.broadcast %16 : vector<1x27x8x1xf32> to vector<1x27x8x32xf32>
    %19 = vector.broadcast %17 : vector<1x1x1x32xf32> to vector<1x27x8x32xf32>
    %20 = arith.mulf %18, %19 : vector<1x27x8x32xf32>
    %21 = arith.addf %15, %20 : vector<1x27x8x32xf32>
    %22 = vector.extract_strided_slice %10 {offsets = [0, 0, 0, 2], sizes = [1, 27, 8, 1], strides = [1, 1, 1, 1]} : vector<1x27x8x3xf32> to vector<1x27x8x1xf32>
    %23 = vector.shape_cast %2 : vector<1x32xf32> to vector<1x1x1x32xf32>
    %24 = vector.broadcast %22 : vector<1x27x8x1xf32> to vector<1x27x8x32xf32>
    %25 = vector.broadcast %23 : vector<1x1x1x32xf32> to vector<1x27x8x32xf32>
    %26 = arith.mulf %24, %25 : vector<1x27x8x32xf32>
    %27 = arith.addf %21, %26 : vector<1x27x8x32xf32>
    %28 = vector.shape_cast %3 : vector<1x32xf32> to vector<1x1x1x32xf32>
    %29 = vector.broadcast %28 : vector<1x1x1x32xf32> to vector<1x27x8x32xf32>
    %30 = arith.addf %27, %29 : vector<1x27x8x32xf32>
    %31 = arith.mulf %30, %30 : vector<1x27x8x32xf32>
    %32 = arith.mulf %31, %30 : vector<1x27x8x32xf32>
    %cst = arith.constant 5.000000e-01 : f32
    %33 = vector.broadcast %cst : f32 to vector<1x27x8x32xf32>
    %34 = arith.mulf %33, %30 : vector<1x27x8x32xf32>
    %cst_13 = arith.constant 4.471500e-02 : f32
    %35 = vector.broadcast %cst_13 : f32 to vector<1x27x8x32xf32>
    %36 = arith.mulf %35, %32 : vector<1x27x8x32xf32>
    %37 = arith.addf %30, %36 : vector<1x27x8x32xf32>
    %cst_14 = arith.constant 0.797884583 : f32
    %38 = vector.broadcast %cst_14 : f32 to vector<1x27x8x32xf32>
    %39 = arith.mulf %38, %37 : vector<1x27x8x32xf32>
    %40 = math.tanh %39 : vector<1x27x8x32xf32>
    %cst_15 = arith.constant 1.000000e+00 : f32
    %41 = vector.broadcast %cst_15 : f32 to vector<1x27x8x32xf32>
    %42 = arith.addf %41, %40 : vector<1x27x8x32xf32>
    %43 = arith.mulf %34, %42 : vector<1x27x8x32xf32>
    %c0_16 = arith.constant 0 : index
    %c0_17 = arith.constant 0 : index
    %c0_18 = arith.constant 0 : index
    %c0_19 = arith.constant 0 : index
    %44 = vector.load %arg5[%c0_16, %c0_17, %c0_18, %c0_19] : memref<1x27x8x32xf32, #tpu.memory_space<vmem>>, vector<1x27x8x32xf32>
    %45 = arith.addf %44, %43 : vector<1x27x8x32xf32>
    %cst_20 = arith.constant dense<0.000000e+00> : vector<1x27x8xf32>
    %46 = vector.multi_reduction <add>, %45, %cst_20 [3] : vector<1x27x8x32xf32> to vector<1x27x8xf32>
    %47 = vector.shape_cast %46 : vector<1x27x8xf32> to vector<1x27x8x1xf32>
    %cst_21 = arith.constant 3.200000e+01 : f32
    %48 = vector.broadcast %cst_21 : f32 to vector<1x27x8x1xf32>
    %49 = arith.divf %47, %48 : vector<1x27x8x1xf32>
    %50 = vector.broadcast %49 : vector<1x27x8x1xf32> to vector<1x27x8x32xf32>
    %51 = arith.subf %45, %50 : vector<1x27x8x32xf32>
    %52 = arith.mulf %51, %51 : vector<1x27x8x32xf32>
    %cst_22 = arith.constant dense<0.000000e+00> : vector<1x27x8xf32>
    %53 = vector.multi_reduction <add>, %52, %cst_22 [3] : vector<1x27x8x32xf32> to vector<1x27x8xf32>
    %54 = vector.shape_cast %53 : vector<1x27x8xf32> to vector<1x27x8x1xf32>
    %cst_23 = arith.constant 3.200000e+01 : f32
    %55 = vector.broadcast %cst_23 : f32 to vector<1x27x8x1xf32>
    %56 = arith.divf %54, %55 : vector<1x27x8x1xf32>
    %cst_24 = arith.constant 9.99999974E-6 : f32
    %57 = vector.broadcast %cst_24 : f32 to vector<1x27x8x1xf32>
    %58 = arith.addf %56, %57 : vector<1x27x8x1xf32>
    %59 = math.rsqrt %58 : vector<1x27x8x1xf32>
    %60 = vector.broadcast %59 : vector<1x27x8x1xf32> to vector<1x27x8x32xf32>
    %61 = arith.mulf %51, %60 : vector<1x27x8x32xf32>
    %62 = vector.shape_cast %4 : vector<1x32xf32> to vector<1x1x1x32xf32>
    %63 = vector.broadcast %62 : vector<1x1x1x32xf32> to vector<1x27x8x32xf32>
    %64 = arith.mulf %61, %63 : vector<1x27x8x32xf32>
    %65 = vector.shape_cast %5 : vector<1x32xf32> to vector<1x1x1x32xf32>
    %66 = vector.broadcast %65 : vector<1x1x1x32xf32> to vector<1x27x8x32xf32>
    %67 = arith.addf %64, %66 : vector<1x27x8x32xf32>
    %c0_25 = arith.constant 0 : index
    %c0_26 = arith.constant 0 : index
    %c0_27 = arith.constant 0 : index
    %c0_28 = arith.constant 0 : index
    %68 = vector.load %arg6[%c0_25, %c0_26, %c0_27, %c0_28] : memref<1x27x8x32xf32, #tpu.memory_space<vmem>>, vector<1x27x8x32xf32>
    tpu.vector_store %arg6[%c0_25, %c0_26, %c0_27, %c0_28], %67 {strides = array<i32>} : memref<1x27x8x32xf32, #tpu.memory_space<vmem>>, vector<1x27x8x32xf32>,
    return
  }
  func.func @transform_0(%arg0: i32, %arg1: i32) -> (i32, i32, i32, i32) {
    %c0_i32 = arith.constant 0 : i32
    %c0_i32_0 = arith.constant 0 : i32
    %c0_i32_1 = arith.constant 0 : i32
    return %arg0, %arg1, %c0_i32, %c0_i32_0 : i32, i32, i32, i32
  }
  func.func @transform_1(%arg0: i32, %arg1: i32) -> (i32, i32, i32) {
    %c0_i32 = arith.constant 0 : i32
    %c0_i32_0 = arith.constant 0 : i32
    %c0_i32_1 = arith.constant 0 : i32
    return %arg0, %c0_i32, %c0_i32_0 : i32, i32, i32
  }
  func.func @transform_2(%arg0: i32, %arg1: i32) -> (i32, i32) {
    %c0_i32 = arith.constant 0 : i32
    %c0_i32_0 = arith.constant 0 : i32
    %c0_i32_1 = arith.constant 0 : i32
    return %c0_i32, %c0_i32_0 : i32, i32
  }
  func.func @transform_3(%arg0: i32, %arg1: i32) -> (i32, i32, i32, i32) {
    %c0_i32 = arith.constant 0 : i32
    %c0_i32_0 = arith.constant 0 : i32
    %c0_i32_1 = arith.constant 0 : i32
    return %arg0, %arg1, %c0_i32, %c0_i32_0 : i32, i32, i32, i32
  }
  func.func @transform_4(%arg0: i32, %arg1: i32) -> (i32, i32, i32, i32) {
    %c0_i32 = arith.constant 0 : i32
    %c0_i32_0 = arith.constant 0 : i32
    %c0_i32_1 = arith.constant 0 : i32
    return %arg0, %arg1, %c0_i32, %c0_i32_0 : i32, i32, i32, i32
  }
}

</mosaic_0001>

<bundles_post_ra>
// kernel: atom_positional_encoding.1
= control target key start
LH: loop header
LB: loop body
LE: loop exit
PB: predicated region body
PF: predicated region fallthrough
CT: control target
= control target key end

     0   :  { %9 = vsyncpa [#allocation3], 0  ;;  %s3373_s0 = inlined_call_operand.vmem [shape: f32[2,27,8,3], index: 0, kind: input, shape index: {}]   ;;  %s3374_s1 = inlined_call_operand.vmem [shape: f32[2,1,3], index: 1, kind: input, shape index: {}]   ;;  %s3375_s2 = inlined_call_operand.vmem [shape: f32[6,32], index: 2, kind: input, shape index: {}]   ;;  %s3376_s3 = inlined_call_operand.vmem [shape: f32[2,27,8,32], index: 3, kind: input, shape index: {}]   ;;  %s3377_s4 = inlined_call_operand.hbm [shape: f32[2,27,8,32], index: 4, kind: output, shape index: {}]  }
   0x1   :  { %11 = vsyncpa [#allocation3 + $0x1], 0  ;;  %s2039_s15 = smov 0   ;;  %s2041_s16 = smov 0  }
   0x2   :  { %s2043_s17 = smov 0   ;;  %s2045_s18 = smov 0  }
   0x3   :  { %s2047_s19 = smov 0   ;;  %s2049_s20 = smov 0  }
   0x4 LB: > { %s1734_s21 = sadd.s32 4294967295, %s2006_s20   ;;  %s1735_s22 = sadd.s32 4294967294, %s2006_s20   ;;  %s2006_s20 = sphi %s2049_s20, %s17_s20   ;;  %s2002_s19 = sphi %s2047_s19, %s3384_s19   ;;  %s1998_s18 = sphi %s2045_s18, %s3383_s18   ;;  %s1994_s17 = sphi %s2043_s17, %s3382_s17   ;;  %s1990_s16 = sphi %s2041_s16, %s3381_s16   ;;  %s1986_s15 = sphi %s2039_s15, %s3380_s15  }
   0x5   : > { %s29_s23 = sadd.s32 1, %s2002_s19  ;;  %s141_s24 = sadd.s32 1, %s1994_s17 }
   0x6   : > { %p31_p0 = scmp.ge.s32.totalorder %s29_s23, 2  ;;  %p151_p1 = scmp.ne.s32.totalorder %s1994_s17, %s1990_s16 }
   0x7   : > { %p152_p2 = scmp.eq.s32.totalorder %s1734_s21, 1  ;;  %p157_p3 = scmp.ne.s32.totalorder %s1990_s16, %s1986_s15 }
   0x8   : > { %s3386_s23 = smov (%p31_p0, %s29_s23), 0  ;;  %p158_p5 = scmp.eq.s32.totalorder %s1735_s22, 1 }
   0x9   : > { %p2079_p4 = por %p152_p2, %p151_p1  ;;  %s136_s26 = ssub.s32 %s2002_s19, %s3386_s23 }
   0xa   : > { %p1738_p6 = scmp.ge.s32.totalorder %s2006_s20, 1  ;;  %p139_p7 = scmp.eq.s32.totalorder %s136_s26, 0 }
   0xb   : > { %p2086_p8 = por %p158_p5, %p157_p3  ;;  %p211_p9 = scmp.lt.s32.totalorder %s2006_s20, 3 }
   0xc   : > { %s2092_s28 = scalar_select %p139_p7, %s1994_s17, %s141_s24  }
   0xd   : > { %p212_p10 = pnand %p1738_p6, %p211_p9 }
   0xe   : > { %p254_p11 = scmp.lt.s32.totalorder (!%p212_p10), %s1998_s18, 1  ;;  %v2008_v0 = vmov (!%p212_p10), 0   ;;  %v2009_v56 = vmov (!%p212_p10), 1   ;;  %v2010_v57 = vmov (!%p212_p10), 2   ;;  %vm1170_vm0 = vcmask (!%p212_p10), 261120   ;;  %s1753_s13 = smul.u32 (!%p212_p10), 3456, %s1998_s18 }
   0xf   : > { %215 = sbr.rel (%p212_p10) target bundleno = 709 (0x2c5), region = 36  ;;  %1815 = vset.pattern.permute.xlu1 (!%p212_p10), %v2008_v0  ;;  %1814 = vset.pattern.permute.xlu0 (!%p212_p10), %v2008_v0  ;;  %s2011_s5 = smov (!%p212_p10), [#allocation2]  }
  0x10   : > { %s1932_s6 = sshll.u32 (!%p212_p10), %s2011_s5, 4  ;;  %s1933_s6 = int_to_ptr.vmem [resolvable:$false] %s1932_s6 }
  0x16   : > { %s2096_s29 = scalar_select %p254_p11, %s1998_s18, 1 }
  0x17   : > { %s3321_s18 = scalar_lea.hbm %s3377_s4, %s1753_s13 }
  0x18   : > { %s1752_s30 = smul.u32 216, %s2096_s29  ;;  %s265_s7 = scalar_lea.vmem %s3374_s1, %s2096_s29 }
  0x19   : > { %v2103_v1 = vld [vmem:[%s265_s7] ss:$0 sm:$0xff]  ;;  %s250_s29 = sand.u32 1, %s1990_s16  }
  0x1a   : > { %s2110_s10 = scalar_lea.vmem %s3373_s0, %s1752_s30  ;;  %s2616_s7 = scalar_lea.vmem %s3376_s3, %s1752_s30 }
  0x1b   : > { %v285_v2 = vld [vmem:[%s2110_s10 + $0x10] sm:$0xff]  ;;  %v283_v3 = vld [vmem:[%s2110_s10] sm:$0xff]  ;;  %v286_v4 = vld [vmem:[%s2110_s10 + $0x18] sm:$0xff]  ;;  %s1751_s9 = smul.u32 216, %s250_s29  ;;  %s3327_s24 = scalar_lea.sflag [#allocation3], %s250_s29 }
  0x1c   : > { %v2116_v5 = vsub.f32 %v285_v2, %v2103_v1  ;;  %v2119_v6 = vsub.f32 %v283_v3, %v2103_v1  ;;  %v284_v7 = vld [vmem:[%s2110_s10 + $0x8] sm:$0xff]  ;;  %v2125_v8 = vsub.f32 %v286_v4, %v2103_v1  ;;  %v287_v11 = vld [vmem:[%s2110_s10 + $0x20] sm:$0xff]  ;;  %v290_v14 = vld [vmem:[%s2110_s10 + $0x38] sm:$0xff] }
  0x1d   : > { %v2128_v9 = vsub.f32 %v284_v7, %v2103_v1  ;;  %v288_v10 = vld [vmem:[%s2110_s10 + $0x28] sm:$0xff]  ;;  %v2138_v13 = vsub.f32 %v287_v11, %v2103_v1  ;;  %v289_v15 = vld [vmem:[%s2110_s10 + $0x30] sm:$0xff]  ;;  %v2145_v16 = vsub.f32 %v290_v14, %v2103_v1  ;;  %v291_v19 = vld [vmem:[%s2110_s10 + $0x40] sm:$0xff]  ;;  %s3184_s12 = scalar_lea.vmem [#allocation2], %s1751_s9 }
  0x1e   : > { %356 = vperm.xlu1 %1815, %v2116_v5   ;;  %346 = vperm.xlu0 %1814, %v2119_v6   ;;  %v2135_v12 = vsub.f32 %v288_v10, %v2103_v1  ;;  %v2148_v17 = vsub.f32 %v289_v15, %v2103_v1  ;;  %v292_v18 = vld [vmem:[%s2110_s10 + $0x48] sm:$0xff]  ;;  %v2158_v21 = vsub.f32 %v291_v19, %v2103_v1  ;;  %v294_v22 = vld [vmem:[%s2110_s10 + $0x58] sm:$0xff]  ;;  %v293_v23 = vld [vmem:[%s2110_s10 + $0x50] sm:$0xff]  ;;  %s1628_s14 = sshll.u32 %s3184_s12, 4  ;;  %s3313_s14 = int_to_ptr.vmem [resolvable:$true] %s1628_s14 }
  0x1f   : > { %v2155_v20 = vsub.f32 %v292_v18, %v2103_v1  ;;  %v2165_v24 = vsub.f32 %v294_v22, %v2103_v1  ;;  %v2168_v25 = vsub.f32 %v293_v23, %v2103_v1  ;;  %v296_v26 = vld [vmem:[%s2110_s10 + $0x68] sm:$0xff]  ;;  %v295_v27 = vld [vmem:[%s2110_s10 + $0x60] sm:$0xff]  ;;  %v298_v30 = vld [vmem:[%s2110_s10 + $0x78] sm:$0xff]  ;;  %s1928_s26 = scalar_lea.vmem %s3313_s14, 3456  ;;  %p1935_p1 = scmp.lt.s32.totalorder %s3313_s14, %s1933_s6 }
  0x20   : > { %v2175_v28 = vsub.f32 %v296_v26, %v2103_v1  ;;  %v2178_v29 = vsub.f32 %v295_v27, %v2103_v1  ;;  %v297_v31 = vld [vmem:[%s2110_s10 + $0x70] sm:$0xff]  ;;  %v2185_v32 = vsub.f32 %v298_v30, %v2103_v1  ;;  %v300_v34 = vld [vmem:[%s2110_s10 + $0x88] sm:$0xff]  ;;  %v299_v35 = vld [vmem:[%s2110_s10 + $0x80] sm:$0xff]  ;;  %p1929_p12 = scmp.ne.s32.totalorder %s3313_s14, %s1928_s26 }
  0x21   : > { %v2188_v33 = vsub.f32 %v297_v31, %v2103_v1  ;;  %v2195_v36 = vsub.f32 %v300_v34, %v2103_v1  ;;  %v2198_v37 = vsub.f32 %v299_v35, %v2103_v1  ;;  %v302_v38 = vld [vmem:[%s2110_s10 + $0x98] sm:$0xff]  ;;  %v301_v39 = vld [vmem:[%s2110_s10 + $0x90] sm:$0xff]  ;;  %v304_v42 = vld [vmem:[%s2110_s10 + $0xa8] sm:$0xff] }
  0x22   : > { %361 = vperm.xlu1 %1815, %v2125_v8   ;;  %351 = vperm.xlu0 %1814, %v2128_v9   ;;  %v2205_v40 = vsub.f32 %v302_v38, %v2103_v1  ;;  %v2208_v41 = vsub.f32 %v301_v39, %v2103_v1  ;;  %v303_v43 = vld [vmem:[%s2110_s10 + $0xa0] sm:$0xff]  ;;  %v2215_v44 = vsub.f32 %v304_v42, %v2103_v1  ;;  %v306_v46 = vld [vmem:[%s2110_s10 + $0xb8] sm:$0xff]  ;;  %v305_v47 = vld [vmem:[%s2110_s10 + $0xb0] sm:$0xff]  ;;  %p1930_p13 = pnand %p1929_p12, %p2079_p4 }
  0x23   : > { %v2218_v45 = vsub.f32 %v303_v43, %v2103_v1  ;;  %v2225_v48 = vsub.f32 %v306_v46, %v2103_v1  ;;  %v2228_v49 = vsub.f32 %v305_v47, %v2103_v1  ;;  %v308_v50 = vld [vmem:[%s2110_s10 + $0xc8] sm:$0xff]  ;;  %v307_v51 = vld [vmem:[%s2110_s10 + $0xc0] sm:$0xff]  ;;  %v309_v54 = vld [vmem:[%s2110_s10 + $0xd0] sm:$0xff] }
  0x24   : > { %v2235_v52 = vsub.f32 %v308_v50, %v2103_v1  ;;  %v2238_v53 = vsub.f32 %v307_v51, %v2103_v1  ;;  %v2244_v55 = vsub.f32 %v309_v54, %v2103_v1  ;;  %p1931_p0 = pneg %p1930_p13 }
  0x26   : > { %371 = vperm.xlu1 %1815, %v2135_v12   ;;  %366 = vperm.xlu0 %1814, %v2138_v13  }
  0x2a   : > { %381 = vperm.xlu1 %1815, %v2145_v16   ;;  %376 = vperm.xlu0 %1814, %v2148_v17  }
  0x2e   : > { %391 = vperm.xlu1 %1815, %v2155_v20   ;;  %386 = vperm.xlu0 %1814, %v2158_v21  }
  0x32   : > { %401 = vperm.xlu1 %1815, %v2165_v24   ;;  %396 = vperm.xlu0 %1814, %v2168_v25  }
  0x36   : > { %411 = vperm.xlu1 %1815, %v2175_v28   ;;  %406 = vperm.xlu0 %1814, %v2178_v29  }
  0x3a   : > { %421 = vperm.xlu1 %1815, %v2185_v32   ;;  %416 = vperm.xlu0 %1814, %v2188_v33  }
  0x3e   : > { %431 = vperm.xlu1 %1815, %v2195_v36   ;;  %426 = vperm.xlu0 %1814, %v2198_v37  }
  0x42   : > { %441 = vperm.xlu1 %1815, %v2205_v40   ;;  %436 = vperm.xlu0 %1814, %v2208_v41  }
  0x46   : > { %451 = vperm.xlu1 %1815, %v2215_v44   ;;  %446 = vperm.xlu0 %1814, %v2218_v45  }
  0x4a   : > { %461 = vperm.xlu1 %1815, %v2225_v48   ;;  %456 = vperm.xlu0 %1814, %v2228_v49  }
  0x4e   : > { %471 = vperm.xlu1 %1815, %v2235_v52   ;;  %466 = vperm.xlu0 %1814, %v2238_v53  }
  0x52   : > { %1816 = vset.pattern.permute.xlu1 %v2009_v56  ;;  %476 = vperm.xlu0 %1814, %v2244_v55  }
  0x53   : > { %511 = vperm.xlu1 %1816, %v2119_v6  }
  0x56   : > { %1817 = vset.pattern.permute.xlu0 %v2009_v56 }
  0x57   : > { %519 = vperm.xlu1 %1816, %v2116_v5   ;;  %515 = vperm.xlu0 %1817, %v2128_v9  }
  0x5b   : > { %523 = vperm.xlu1 %1816, %v2125_v8   ;;  %527 = vperm.xlu0 %1817, %v2138_v13  }
  0x5f   : > { %531 = vperm.xlu1 %1816, %v2135_v12   ;;  %535 = vperm.xlu0 %1817, %v2148_v17  }
  0x63   : > { %539 = vperm.xlu1 %1816, %v2145_v16   ;;  %543 = vperm.xlu0 %1817, %v2158_v21  }
  0x67   : > { %547 = vperm.xlu1 %1816, %v2155_v20   ;;  %551 = vperm.xlu0 %1817, %v2168_v25  }
  0x6b   : > { %555 = vperm.xlu1 %1816, %v2165_v24   ;;  %559 = vperm.xlu0 %1817, %v2178_v29  }
  0x6f   : > { %563 = vperm.xlu1 %1816, %v2175_v28   ;;  %567 = vperm.xlu0 %1817, %v2188_v33  }
  0x73   : > { %571 = vperm.xlu1 %1816, %v2185_v32   ;;  %575 = vperm.xlu0 %1817, %v2198_v37  }
  0x77   : > { %579 = vperm.xlu1 %1816, %v2195_v36   ;;  %583 = vperm.xlu0 %1817, %v2208_v41  }
  0x7b   : > { %587 = vperm.xlu1 %1816, %v2205_v40   ;;  %591 = vperm.xlu0 %1817, %v2218_v45  }
  0x7f   : > { %595 = vperm.xlu1 %1816, %v2215_v44   ;;  %599 = vperm.xlu0 %1817, %v2228_v49  }
  0x83   : > { %603 = vperm.xlu1 %1816, %v2225_v48   ;;  %607 = vperm.xlu0 %1817, %v2238_v53  }
  0x87   : > { %611 = vperm.xlu1 %1816, %v2235_v52   ;;  %615 = vperm.xlu0 %1817, %v2244_v55  }
  0x8b   : > { %1818 = vset.pattern.permute.xlu1 %v2010_v57  ;;  %1819 = vset.pattern.permute.xlu0 %v2010_v57 }
  0x8c   : > { %677 = vperm.xlu1 %1818, %v2119_v6   ;;  %681 = vperm.xlu0 %1819, %v2128_v9  }
  0x90   : > { %685 = vperm.xlu1 %1818, %v2116_v5   ;;  %693 = vperm.xlu0 %1819, %v2138_v13  }
  0x94   : > { %689 = vperm.xlu1 %1818, %v2125_v8   ;;  %701 = vperm.xlu0 %1819, %v2148_v17  }
  0x98   : > { %697 = vperm.xlu1 %1818, %v2135_v12   ;;  %709 = vperm.xlu0 %1819, %v2158_v21  }
  0x9c   : > { %705 = vperm.xlu1 %1818, %v2145_v16   ;;  %717 = vperm.xlu0 %1819, %v2168_v25  }
  0x9d   : > { %v2284_v58 = vpop.permute.xlu1 %356  ;;  %v2286_v59 = vpop.permute.xlu0 %346 }
  0xa0   : > { %713 = vperm.xlu1 %1818, %v2155_v20   ;;  %725 = vperm.xlu0 %1819, %v2178_v29  }
  0xa1   : > { %v2290_v60 = vpop.permute.xlu1 %361  ;;  %v2292_v61 = vpop.permute.xlu0 %351 }
  0xa4   : > { %721 = vperm.xlu1 %1818, %v2165_v24   ;;  %733 = vperm.xlu0 %1819, %v2188_v33  }
  0xa5   : > { %v2296_v62 = vpop.permute.xlu1 %371  ;;  %v2298_v63 = vpop.permute.xlu0 %366 }
  0xa8   : > { %729 = vperm.xlu1 %1818, %v2175_v28   ;;  %741 = vperm.xlu0 %1819, %v2198_v37  }
  0xa9   : > { %v2302_v0 = vpop.permute.xlu1 %381  ;;  %v2304_v1 = vpop.permute.xlu0 %376 }
  0xac   : > { %737 = vperm.xlu1 %1818, %v2185_v32   ;;  %749 = vperm.xlu0 %1819, %v2208_v41   ;;  %v2385_v41 = vld [vmem:[%s3375_s2 + $0x1] ss:$0 sm:$0xff] }
  0xad   : > { %v2308_v2 = vpop.permute.xlu1 %391  ;;  %v2310_v3 = vpop.permute.xlu0 %386 }
  0xb0   : > { %745 = vperm.xlu1 %1818, %v2195_v36   ;;  %757 = vperm.xlu0 %1819, %v2218_v45  }
  0xb1   : > { %v2314_v4 = vpop.permute.xlu1 %401  ;;  %v2316_v5 = vpop.permute.xlu0 %396 }
  0xb4   : > { %753 = vperm.xlu1 %1818, %v2205_v40   ;;  %765 = vperm.xlu0 %1819, %v2228_v49   ;;  %v1742_v40 = vld [vmem:[%s3375_s2] ss:$0 sm:$0xff] }
  0xb5   : > { %v2320_v6 = vpop.permute.xlu1 %411  ;;  %v2322_v7 = vpop.permute.xlu0 %406  ;;  %v485_v56 = vmul.f32 %v1742_v40, %v2284_v58 }
  0xb8   : > { %761 = vperm.xlu1 %1818, %v2215_v44   ;;  %773 = vperm.xlu0 %1819, %v2238_v53  }
  0xb9   : > { %v2326_v8 = vpop.permute.xlu1 %421  ;;  %v2328_v9 = vpop.permute.xlu0 %416 }
  0xbc   : > { %769 = vperm.xlu1 %1818, %v2225_v48   ;;  %781 = vperm.xlu0 %1819, %v2244_v55  }
  0xbd   : > { %v2332_v10 = vpop.permute.xlu1 %431  ;;  %v2334_v11 = vpop.permute.xlu0 %426 }
  0xc0   : > { %777 = vperm.xlu1 %1818, %v2235_v52  }
  0xc1   : > { %v442_v12 = vpop.permute.xlu1 %441  ;;  %v2337_v13 = vpop.permute.xlu0 %436 }
  0xc2   : > { %v502_v44 = vmul.f32 %v1742_v40, %v442_v12 }
  0xc5   : > { %v452_v14 = vpop.permute.xlu1 %451  ;;  %v447_v15 = vpop.permute.xlu0 %446 }
  0xc6   : > { %v503_v45 = vmul.f32 %v1742_v40, %v447_v15  ;;  %v504_v52 = vmul.f32 %v1742_v40, %v452_v14  ;;  %v483_v15 = vmul.f32 %v1742_v40, %v2286_v59  ;;  %v489_v59 = vmul.f32 %v1742_v40, %v2304_v1 }
  0xc9   : > { %v462_v16 = vpop.permute.xlu1 %461  ;;  %v457_v17 = vpop.permute.xlu0 %456 }
  0xca   : > { %v505_v53 = vmul.f32 %v1742_v40, %v457_v17 }
  0xcd   : > { %v472_v18 = vpop.permute.xlu1 %471  ;;  %v467_v19 = vpop.permute.xlu0 %466 }
  0xd1   : > { %v2339_v20 = vpop.permute.xlu0 %476 }
  0xd2   : > { %v2341_v21 = vpop.permute.xlu1 %511 }
  0xd6   : > { %v2343_v22 = vpop.permute.xlu1 %519  ;;  %v2345_v23 = vpop.permute.xlu0 %515 }
  0xda   : > { %v2347_v24 = vpop.permute.xlu1 %523  ;;  %v2349_v25 = vpop.permute.xlu0 %527 }
  0xde   : > { %v2351_v26 = vpop.permute.xlu1 %531  ;;  %v2353_v27 = vpop.permute.xlu0 %535 }
  0xe2   : > { %v2355_v28 = vpop.permute.xlu1 %539  ;;  %v2357_v29 = vpop.permute.xlu0 %543 }
  0xe6   : > { %v2359_v30 = vpop.permute.xlu1 %547  ;;  %v2361_v31 = vpop.permute.xlu0 %551 }
  0xea   : > { %v2363_v32 = vpop.permute.xlu1 %555  ;;  %v2365_v33 = vpop.permute.xlu0 %559 }
  0xee   : > { %v2367_v34 = vpop.permute.xlu1 %563  ;;  %v2369_v35 = vpop.permute.xlu0 %567 }
  0xf2   : > { %v2371_v36 = vpop.permute.xlu1 %571  ;;  %v2373_v37 = vpop.permute.xlu0 %575 }
  0xf6   : > { %v2375_v38 = vpop.permute.xlu1 %579  ;;  %v2377_v39 = vpop.permute.xlu0 %583 }
  0xfa   : > { %v588_v42 = vpop.permute.xlu1 %587  ;;  %v592_v43 = vpop.permute.xlu0 %591 }
  0xfb   : > { %v641_v46 = vmul.f32 %v2385_v41, %v588_v42  ;;  %v642_v47 = vmul.f32 %v2385_v41, %v592_v43  ;;  %v486_v42 = vmul.f32 %v1742_v40, %v2290_v60  ;;  %v484_v43 = vmul.f32 %v1742_v40, %v2292_v61 }
  0xfc   : > { %v492_v60 = vmul.f32 %v1742_v40, %v2308_v2  ;;  %v491_v61 = vmul.f32 %v1742_v40, %v2310_v3  ;;  %v509_v2 = vmul.f32 %v1742_v40, %v2339_v20  ;;  %v622_v3 = vmul.f32 %v2385_v41, %v2341_v21 }
  0xfd   : > { %v2389_v48 = vadd.f32 %v641_v46, %v502_v44  ;;  %v2391_v49 = vadd.f32 %v642_v47, %v503_v45  ;;  %v488_v44 = vmul.f32 %v1742_v40, %v2296_v62  ;;  %v506_v45 = vmul.f32 %v1742_v40, %v462_v16 }
  0xfe   : > { %v596_v50 = vpop.permute.xlu1 %595  ;;  %v600_v51 = vpop.permute.xlu0 %599  ;;  %v507_v46 = vmul.f32 %v1742_v40, %v467_v19  ;;  %v2412_v62 = vmul.f32 %v1742_v40, %v2314_v4  ;;  %v493_v19 = vmul.f32 %v1742_v40, %v2316_v5  ;;  %v497_v5 = vmul.f32 %v1742_v40, %v2328_v9 }
  0xff   : > { %v643_v54 = vmul.f32 %v2385_v41, %v596_v50  ;;  %v644_v55 = vmul.f32 %v2385_v41, %v600_v51  ;;  %v487_v50 = vmul.f32 %v1742_v40, %v2298_v63  ;;  %v490_v51 = vmul.f32 %v1742_v40, %v2302_v0 }
 0x100   : > { %v495_v63 = vmul.f32 %v1742_v40, %v2322_v7  ;;  %v508_v0 = vmul.f32 %v1742_v40, %v472_v18  ;;  %v623_v7 = vmul.f32 %v2385_v41, %v2345_v23  ;;  %v625_v18 = vmul.f32 %v2385_v41, %v2347_v24 }
 0x101   : > { %v2396_v57 = vadd.f32 %v643_v54, %v504_v52  ;;  %v2398_v12 = vadd.f32 %v644_v55, %v505_v53  ;;  %v2420_v53 = vmul.f32 %v1742_v40, %v2320_v6  ;;  %v624_v6 = vmul.f32 %v2385_v41, %v2343_v22 }
 0x102   : > { %v604_v14 = vpop.permute.xlu1 %603  ;;  %v608_v17 = vpop.permute.xlu0 %607  ;;  %v626_v20 = vmul.f32 %v2385_v41, %v2349_v25  ;;  %v2450_v9 = vmul.f32 %v1742_v40, %v2332_v10  ;;  %v499_v22 = vmul.f32 %v1742_v40, %v2334_v11  ;;  %v627_v23 = vmul.f32 %v2385_v41, %v2351_v26 }
 0x103   : > { %v645_v47 = vmul.f32 %v2385_v41, %v604_v14  ;;  %v646_v58 = vmul.f32 %v2385_v41, %v608_v17  ;;  %v2429_v14 = vmul.f32 %v1742_v40, %v2326_v8  ;;  %v2447_v8 = vld [vmem:[%s3375_s2 + $0x2] ss:$0 sm:$0xff]  ;;  %v628_v24 = vmul.f32 %v2385_v41, %v2353_v27 }
 0x104   : > { %v2458_v25 = vmul.f32 %v1742_v40, %v2337_v13  ;;  %v650_v11 = vadd.f32 %v623_v7, %v484_v43  ;;  %v653_v27 = vadd.f32 %v626_v20, %v487_v50  ;;  %v631_v13 = vmul.f32 %v2385_v41, %v2359_v30 }
 0x105   : > { %v2414_v52 = vadd.f32 %v645_v47, %v506_v45  ;;  %v2416_v16 = vadd.f32 %v646_v58, %v507_v46  ;;  %v649_v45 = vadd.f32 %v622_v3, %v483_v15  ;;  %v629_v46 = vmul.f32 %v2385_v41, %v2355_v28  ;;  %v2473_v28 = vld [vmem:[%s3375_s2 + $0x3] ss:$0 sm:$0xff] }
 0x106   : > { %v612_v1 = vpop.permute.xlu1 %611  ;;  %v616_v54 = vpop.permute.xlu0 %615  ;;  %v630_v47 = vmul.f32 %v2385_v41, %v2357_v29  ;;  %v632_v40 = vmul.f32 %v2385_v41, %v2361_v31  ;;  %v654_v29 = vadd.f32 %v627_v23, %v488_v44  ;;  %v634_v30 = vmul.f32 %v2385_v41, %v2365_v33 }
 0x107   : > { %v647_v4 = vmul.f32 %v2385_v41, %v612_v1  ;;  %v648_v55 = vmul.f32 %v2385_v41, %v616_v54  ;;  %v652_v54 = vadd.f32 %v625_v18, %v486_v42  ;;  %v633_v42 = vmul.f32 %v2385_v41, %v2363_v32 }
 0x108   : > { %v657_v3 = vadd.f32 %v630_v47, %v491_v61  ;;  %v659_v61 = vadd.f32 %v632_v40, %v493_v19  ;;  %v635_v32 = vmul.f32 %v2385_v41, %v2367_v34  ;;  %v636_v33 = vmul.f32 %v2385_v41, %v2369_v35 }
 0x109   : > { %v2440_v21 = vadd.f32 %v647_v4, %v508_v0  ;;  %v2442_v17 = vadd.f32 %v648_v55, %v509_v2  ;;  %v651_v0 = vadd.f32 %v624_v6, %v485_v56  ;;  %v655_v56 = vadd.f32 %v628_v24, %v489_v59 }
 0x10a   : > { %v2475_v2 = vadd.f32 %v629_v46, %v490_v51  ;;  %v2489_v59 = vadd.f32 %v631_v13, %v492_v60  ;;  %v2500_v23 = vadd.f32 %v633_v42, %v2412_v62  ;;  %v2502_v60 = vadd.f32 %v634_v30, %v495_v63 }
 0x10b   : > { %v678_v10 = vpop.permute.xlu1 %677  ;;  %v682_v58 = vpop.permute.xlu0 %681  ;;  %v637_v19 = vmul.f32 %v2385_v41, %v2371_v36  ;;  %v638_v34 = vmul.f32 %v2385_v41, %v2373_v37  ;;  %v2517_v63 = vadd.f32 %v635_v32, %v2420_v53  ;;  %v640_v32 = vmul.f32 %v2385_v41, %v2377_v39 }
 0x10c   : > { %v788_v1 = vmul.f32 %v2447_v8, %v678_v10  ;;  %v789_v26 = vmul.f32 %v2447_v8, %v682_v58  ;;  %v2519_v10 = vadd.f32 %v636_v33, %v497_v5 }
 0x10e   : > { %v815_v15 = vadd.f32 %v788_v1, %v649_v45  ;;  %v816_v43 = vadd.f32 %v789_v26, %v650_v11  ;;  %v2528_v26 = vadd.f32 %v637_v19, %v2429_v14 }
 0x10f   : > { %v686_v50 = vpop.permute.xlu1 %685  ;;  %v694_v31 = vpop.permute.xlu0 %693 }
 0x110   : > { %v2482_v4 = vadd.f32 %v2473_v28, %v815_v15  ;;  %v2485_v55 = vadd.f32 %v2473_v28, %v816_v43  ;;  %v790_v44 = vmul.f32 %v2447_v8, %v686_v50  ;;  %v792_v51 = vmul.f32 %v2447_v8, %v694_v31 }
 0x112   : > { %v873_v6 = vmul.f32 %v2482_v4, %v2482_v4  ;;  %v874_v7 = vmul.f32 %v2485_v55, %v2485_v55  ;;  %v817_v18 = vadd.f32 %v790_v44, %v651_v0  ;;  %v819_v20 = vadd.f32 %v792_v51, %v653_v27 }
 0x113   : > { %v690_v35 = vpop.permute.xlu1 %689  ;;  %v702_v24 = vpop.permute.xlu0 %701  ;;  %v2530_v27 = vadd.f32 %v638_v34, %v499_v22 }
 0x114   : > { %v900_v45 = vmul.f32 %v873_v6, %v2482_v4  ;;  %v901_v46 = vmul.f32 %v874_v7, %v2485_v55  ;;  %v2511_v47 = vadd.f32 %v2473_v28, %v817_v18  ;;  %v2514_v62 = vadd.f32 %v2473_v28, %v819_v20 }
 0x115   : > { %v791_v36 = vmul.f32 %v2447_v8, %v690_v35  ;;  %v794_v37 = vmul.f32 %v2447_v8, %v702_v24 }
 0x116   : > { %v875_v58 = vmul.f32 %v2511_v47, %v2511_v47  ;;  %v877_v0 = vmul.f32 %v2514_v62, %v2514_v62  ;;  %v954_v11 = vmul.f32 0.044715, %v900_v45  ;;  %v955_v1 = vmul.f32 0.044715, %v901_v46 }
 0x117   : > { %v818_v53 = vadd.f32 %v791_v36, %v652_v54  ;;  %v821_v5 = vadd.f32 %v794_v37, %v655_v56  ;;  %v698_v13 = vpop.permute.xlu1 %697  ;;  %v710_v40 = vpop.permute.xlu0 %709  ;;  %v639_v56 = vmul.f32 %v2385_v41, %v2375_v38 }
 0x118   : > { %v902_v15 = vmul.f32 %v875_v58, %v2511_v47  ;;  %v904_v43 = vmul.f32 %v877_v0, %v2514_v62  ;;  %v793_v42 = vmul.f32 %v2447_v8, %v698_v13  ;;  %v796_v30 = vmul.f32 %v2447_v8, %v710_v40 }
 0x119   : > { %v2537_v50 = vadd.f32 %v2473_v28, %v818_v53  ;;  %v2540_v14 = vadd.f32 %v2473_v28, %v821_v5  ;;  %v981_v22 = vadd.f32 %v954_v11, %v2482_v4  ;;  %v982_v54 = vadd.f32 %v955_v1, %v2485_v55 }
 0x11a   : > { %v820_v31 = vadd.f32 %v793_v42, %v654_v29  ;;  %v823_v44 = vadd.f32 %v796_v30, %v657_v3  ;;  %v956_v51 = vmul.f32 0.044715, %v902_v15  ;;  %v958_v29 = vmul.f32 0.044715, %v904_v43 }
 0x11b   : > { %v876_v33 = vmul.f32 %v2537_v50, %v2537_v50  ;;  %v706_v6 = vpop.permute.xlu1 %705  ;;  %v718_v7 = vpop.permute.xlu0 %717  ;;  %v1008_v18 = vmul.f32 0.7978846, %v981_v22  ;;  %v1009_v20 = vmul.f32 0.7978846, %v982_v54  ;;  %v879_v39 = vmul.f32 %v2540_v14, %v2540_v14 }
 0x11c   : > { %v2551_v19 = vadd.f32 %v2473_v28, %v820_v31  ;;  %v795_v34 = vmul.f32 %v2447_v8, %v706_v6  ;;  %v798_v38 = vmul.f32 %v2447_v8, %v718_v7  ;;  %v983_v41 = vadd.f32 %v956_v51, %v2511_v47 }
 0x11d   : > { %v903_v3 = vmul.f32 %v876_v33, %v2537_v50  ;;  %1820 = vtanh.f32 %v1008_v18  ;;  %v2562_v24 = vadd.f32 %v2473_v28, %v823_v44  ;;  %v2566_v36 = vadd.f32 %v639_v56, %v2450_v9 }
 0x11e   : > { %v878_v35 = vmul.f32 %v2551_v19, %v2551_v19  ;;  %v822_v45 = vadd.f32 %v795_v34, %v2475_v2  ;;  %v825_v46 = vadd.f32 %v798_v38, %v659_v61  ;;  %1822 = vtanh.f32 %v1009_v20 }
 0x11f   : > { %v714_v37 = vpop.permute.xlu1 %713  ;;  %v726_v58 = vpop.permute.xlu0 %725  ;;  %v1010_v0 = vmul.f32 0.7978846, %v983_v41  ;;  %v957_v11 = vmul.f32 0.044715, %v903_v3  ;;  %v2569_v1 = vadd.f32 %v640_v32, %v2458_v25  ;;  %v927_v13 = vmul.f32 0.5, %v2482_v4 }
 0x120   : > { %v905_v53 = vmul.f32 %v878_v35, %v2551_v19  ;;  %v2573_v5 = vadd.f32 %v2473_v28, %v822_v45  ;;  %v797_v2 = vmul.f32 %v2447_v8, %v714_v37  ;;  %v800_v9 = vmul.f32 %v2447_v8, %v726_v58 }
 0x121   : > { %1824 = vtanh.f32 %v1010_v0  ;;  %v984_v61 = vadd.f32 %v957_v11, %v2537_v50  ;;  %v906_v40 = vmul.f32 %v879_v39, %v2540_v14  ;;  %v881_v25 = vmul.f32 %v2562_v24, %v2562_v24 }
 0x122   : > { %v2583_v15 = vadd.f32 %v2473_v28, %v825_v46  ;;  %v985_v43 = vadd.f32 %v958_v29, %v2514_v62  ;;  %v824_v42 = vadd.f32 %v797_v2, %v2489_v59  ;;  %v827_v4 = vadd.f32 %v800_v9, %v2502_v60 }
 0x123   : > { %v722_v30 = vpop.permute.xlu1 %721  ;;  %v734_v22 = vpop.permute.xlu0 %733  ;;  %v1011_v54 = vmul.f32 0.7978846, %v984_v61  ;;  %v959_v56 = vmul.f32 0.044715, %v905_v53  ;;  %v928_v51 = vmul.f32 0.5, %v2485_v55  ;;  %v2592_v32 = vmul.f32 0.5, %v2511_v47 }
 0x124   : > { %v799_v31 = vmul.f32 %v2447_v8, %v722_v30  ;;  %v802_v44 = vmul.f32 %v2447_v8, %v734_v22  ;;  %v880_v59 = vmul.f32 %v2573_v5, %v2573_v5  ;;  %v2597_v60 = vmul.f32 0.5, %v2514_v62  ;;  %v1116_v53 = vld [vmem:[%s2616_s7] sm:$0xff]  ;;  %v1117_v30 = vld [vmem:[%s2616_s7 + $0x8] sm:$0xff] }
 0x125   : > { %1826 = vtanh.f32 %v1011_v54  ;;  %v1012_v33 = vmul.f32 0.7978846, %v985_v43  ;;  %v883_v6 = vmul.f32 %v2583_v15, %v2583_v15  ;;  %v2602_v7 = vadd.f32 %v2473_v28, %v824_v42 }
 0x126   : > { %v2605_v18 = vadd.f32 %v2473_v28, %v827_v4  ;;  %v986_v55 = vadd.f32 %v959_v56, %v2551_v19  ;;  %v2609_v20 = vmul.f32 %v881_v25, %v2562_v24  ;;  %v2619_v62 = vmul.f32 0.5, %v2537_v50 }
 0x127   : > { %v1821_v47 = vpop.eup %1820  ;;  %v730_v34 = vpop.permute.xlu1 %729  ;;  %1828 = vtanh.f32 %v1012_v33  ;;  %v960_v29 = vmul.f32 0.044715, %v906_v40  ;;  %v826_v3 = vadd.f32 %v799_v31, %v2500_v23  ;;  %v829_v39 = vadd.f32 %v802_v44, %v2519_v10 }
 0x128   : > { %v742_v38 = vpop.permute.xlu0 %741  ;;  %v801_v41 = vmul.f32 %v2447_v8, %v730_v34  ;;  %v1823_v45 = vpop.eup %1822  ;;  %v2626_v46 = vmul.f32 %v880_v59, %v2573_v5  ;;  %v1062_v37 = vadd.f32 1.0, %v1821_v47  ;;  %v2629_v58 = vmul.f32 0.5, %v2551_v19 }
 0x129   : > { %v804_v35 = vmul.f32 %v2447_v8, %v742_v38  ;;  %v1013_v50 = vmul.f32 0.7978846, %v986_v55  ;;  %v2632_v0 = vmul.f32 %v883_v6, %v2583_v15  ;;  %v882_v23 = vmul.f32 %v2602_v7, %v2602_v7 }
 0x12a   : > { %v885_v10 = vmul.f32 %v2605_v18, %v2605_v18  ;;  %v828_v11 = vadd.f32 %v801_v41, %v2517_v63  ;;  %v1089_v40 = vmul.f32 %v1062_v37, %v927_v13  ;;  %v1063_v19 = vadd.f32 1.0, %v1823_v45 }
 0x12b   : > { %v1825_v2 = vpop.eup %1824  ;;  %v738_v9 = vpop.permute.xlu1 %737  ;;  %1830 = vtanh.f32 %v1013_v50  ;;  %v987_v25 = vadd.f32 %v960_v29, %v2540_v14  ;;  %v2642_v43 = vadd.f32 %v2473_v28, %v826_v3  ;;  %v2645_v42 = vadd.f32 %v2473_v28, %v829_v39 }
 0x12c   : > { %v750_v61 = vpop.permute.xlu0 %749  ;;  %v831_v4 = vadd.f32 %v804_v35, %v2530_v27  ;;  %v2650_v63 = vmul.f32 0.5, %v2540_v14  ;;  %v2653_v22 = vadd.f32 %v2473_v28, %v828_v11  ;;  %v2656_v54 = vadd.f32 %v1116_v53, %v1089_v40 }
 0x12d   : > { %v806_v13 = vmul.f32 %v2447_v8, %v750_v61  ;;  %v1090_v56 = vmul.f32 %v1063_v19, %v928_v51  ;;  %v2659_v31 = vmul.f32 %v882_v23, %v2602_v7  ;;  %v2662_v44 = vmul.f32 %v885_v10, %v2605_v18 }
 0x12e   : > { %v803_v27 = vmul.f32 %v2447_v8, %v738_v9  ;;  %v1064_v59 = vadd.f32 1.0, %v1825_v2  ;;  %v1171_v6 = vsel %vm1170_vm0, %v2656_v54, 0.0  ;;  %v1014_v34 = vmul.f32 0.7978846, %v987_v25 }
 0x12f   : > { %v1827_v14 = vpop.eup %1826  ;;  %v833_v33 = vadd.f32 %v806_v13, %v2569_v1  ;;  %v2668_v55 = vadd.f32 %v1117_v30, %v1090_v56  ;;  %v746_v47 = vpop.permute.xlu1 %745  ;;  %v884_v38 = vmul.f32 %v2642_v43, %v2642_v43  ;;  %v887_v29 = vmul.f32 %v2645_v42, %v2645_v42  ;;  %1172 = vadd.xlane.f32.xlu1 %v1171_v6  ;;  %v1118_v1 = vld [vmem:[%s2616_s7 + $0x10] sm:$0xff] }
 0x130   : > { %v758_v51 = vpop.permute.xlu0 %757  ;;  %v805_v3 = vmul.f32 %v2447_v8, %v746_v47  ;;  %v886_v35 = vmul.f32 %v2653_v22, %v2653_v22  ;;  %v2680_v45 = vadd.f32 %v2473_v28, %v831_v4  ;;  %v1091_v50 = vmul.f32 %v1064_v59, %v2592_v32  ;;  %v1119_v4 = vld [vmem:[%s2616_s7 + $0x18] sm:$0xff]  ;;  %v1120_v47 = vld [vmem:[%s2616_s7 + $0x20] sm:$0xff] }
 0x131   : > { %v808_v39 = vmul.f32 %v2447_v8, %v758_v51  ;;  %v1829_v41 = vpop.eup %1828  ;;  %v1174_v37 = vsel %vm1170_vm0, %v2668_v55, 0.0  ;;  %v2686_v23 = vadd.f32 %v2473_v28, %v833_v33  ;;  %v1065_v53 = vadd.f32 1.0, %v1827_v14 }
 0x132   : > { %1175 = vadd.xlane.f32.xlu0 %v1174_v37  ;;  %v832_v10 = vadd.f32 %v805_v3, %v2566_v36  ;;  %v830_v2 = vadd.f32 %v803_v27, %v2528_v26  ;;  %v2691_v9 = vadd.f32 %v1118_v1, %v1091_v50  ;;  %v1066_v19 = vadd.f32 1.0, %v1829_v41 }
 0x133   : > { %v835_v11 = vadd.f32 %v808_v39, %v2391_v49  ;;  %v754_v61 = vpop.permute.xlu1 %753  ;;  %1832 = vtanh.f32 %v1014_v34  ;;  %v2703_v26 = vmul.f32 %v884_v38, %v2642_v43  ;;  %v889_v13 = vmul.f32 %v2680_v45, %v2680_v45 }
 0x134   : > { %v766_v40 = vpop.permute.xlu0 %765  ;;  %v2694_v32 = vadd.f32 %v2473_v28, %v832_v10  ;;  %v807_v36 = vmul.f32 %v2447_v8, %v754_v61  ;;  %v1177_v56 = vsel %vm1170_vm0, %v2691_v9, 0.0  ;;  %v1092_v27 = vmul.f32 %v1065_v53, %v2619_v62 }
 0x135   : > { %v2697_v25 = vadd.f32 %v2473_v28, %v835_v11  ;;  %v810_v49 = vmul.f32 %v2447_v8, %v766_v40  ;;  %v1831_v30 = vpop.eup %1830  ;;  %v891_v59 = vmul.f32 %v2686_v23, %v2686_v23  ;;  %v2718_v51 = vmul.f32 %v887_v29, %v2645_v42 }
 0x136   : > { %v890_v14 = vmul.f32 %v2694_v32, %v2694_v32  ;;  %1178 = vadd.xlane.f32.xlu0 %v1177_v56  ;;  %v834_v33 = vadd.f32 %v807_v36, %v2389_v48  ;;  %v2720_v34 = vadd.f32 %v1119_v4, %v1092_v27  ;;  %v1093_v38 = vmul.f32 %v1066_v19, %v2597_v60 }
 0x137   : > { %v837_v6 = vadd.f32 %v810_v49, %v2398_v12  ;;  %v762_v62 = vpop.permute.xlu1 %761  ;;  %v1067_v39 = vadd.f32 1.0, %v1831_v30  ;;  %v2724_v1 = vmul.f32 %v886_v35, %v2653_v22  ;;  %v2727_v41 = vadd.f32 %v2473_v28, %v830_v2  ;;  %v1121_v2 = vld [vmem:[%s2616_s7 + $0x28] sm:$0xff] }
 0x138   : > { %v774_v3 = vpop.permute.xlu0 %773  ;;  %v2730_v48 = vadd.f32 %v2473_v28, %v834_v33  ;;  %v1180_v29 = vsel %vm1170_vm0, %v2720_v34, 0.0  ;;  %v2737_v60 = vadd.f32 %v1120_v47, %v1093_v38  ;;  %v809_v37 = vmul.f32 %v2447_v8, %v762_v62 }
 0x139   : > { %v2733_v12 = vadd.f32 %v2473_v28, %v837_v6  ;;  %v812_v50 = vmul.f32 %v2447_v8, %v774_v3  ;;  %v2742_v35 = vmul.f32 %v889_v13, %v2680_v45  ;;  %v918_v10 = vmul.f32 %v891_v59, %v2686_v23  ;;  %1181 = vadd.xlane.f32.xlu1 %v1180_v29  ;;  %v1122_v29 = vld [vmem:[%s2616_s7 + $0x30] sm:$0xff] }
 0x13a   : > { %v917_v11 = vmul.f32 %v890_v14, %v2694_v32  ;;  %v893_v53 = vmul.f32 %v2697_v25, %v2697_v25  ;;  %v1183_v61 = vsel %vm1170_vm0, %v2737_v60, 0.0  ;;  %v836_v40 = vadd.f32 %v809_v37, %v2396_v57 }
 0x13b   : > { %v839_v19 = vadd.f32 %v812_v50, %v2416_v16  ;;  %v1094_v36 = vmul.f32 %v1067_v39, %v2629_v58  ;;  %v770_v49 = vpop.permute.xlu1 %769  ;;  %v888_v30 = vmul.f32 %v2727_v41, %v2727_v41  ;;  %v892_v13 = vmul.f32 %v2730_v48, %v2730_v48  ;;  %1184 = vadd.xlane.f32.xlu0 %v1183_v61 }
 0x13c   : > { %v782_v4 = vpop.permute.xlu0 %781  ;;  %v811_v56 = vmul.f32 %v2447_v8, %v770_v49  ;;  %v895_v57 = vmul.f32 %v2733_v12, %v2733_v12  ;;  %v2763_v16 = vadd.f32 %v2473_v28, %v836_v40  ;;  %v2770_v33 = vmul.f32 0.044715, %v918_v10 }
 0x13d   : > { %v814_v27 = vmul.f32 %v2447_v8, %v782_v4  ;;  %v1833_v59 = vpop.eup %1832  ;;  %v2766_v58 = vadd.f32 %v2473_v28, %v839_v19  ;;  %v2768_v14 = vadd.f32 %v1121_v2, %v1094_v36  ;;  %v920_v6 = vmul.f32 %v893_v53, %v2697_v25 }
 0x13e   : > { %v1068_v47 = vadd.f32 1.0, %v1833_v59  ;;  %v838_v38 = vadd.f32 %v811_v56, %v2414_v52  ;;  %v2774_v62 = vmul.f32 0.044715, %v917_v11  ;;  %v894_v3 = vmul.f32 %v2763_v16, %v2763_v16 }
 0x13f   : > { %v1186_v39 = vsel %vm1170_vm0, %v2768_v14, 0.0  ;;  %v841_v37 = vadd.f32 %v814_v27, %v2442_v17  ;;  %v778_v50 = vpop.permute.xlu1 %777  ;;  %v897_v10 = vmul.f32 %v2766_v58, %v2766_v58  ;;  %v961_v11 = vmul.f32 0.044715, %v2626_v46 }
 0x140   : > { %1187 = vadd.xlane.f32.xlu1 %v1186_v39  ;;  %v1095_v53 = vmul.f32 %v1068_v47, %v2650_v63  ;;  %v2786_v52 = vadd.f32 %v2473_v28, %v838_v38  ;;  %v919_v2 = vmul.f32 %v892_v13, %v2730_v48  ;;  %v922_v61 = vmul.f32 %v895_v57, %v2733_v12 }
 0x141   : > { %v2792_v40 = vadd.f32 %v2473_v28, %v841_v37  ;;  %v962_v17 = vmul.f32 0.044715, %v2609_v20  ;;  %v988_v63 = vadd.f32 %v961_v11, %v2573_v5  ;;  %v813_v49 = vmul.f32 %v2447_v8, %v778_v50 }
 0x142   : > { %v2795_v19 = vadd.f32 %v1122_v29, %v1095_v53  ;;  %v896_v36 = vmul.f32 %v2786_v52, %v2786_v52  ;;  %v2801_v4 = vmul.f32 0.044715, %v920_v6  ;;  %v921_v46 = vmul.f32 %v894_v3, %v2763_v16 }
 0x143   : > { %v2805_v13 = vmul.f32 0.5, %v2573_v5  ;;  %v989_v56 = vadd.f32 %v962_v17, %v2562_v24  ;;  %v924_v20 = vmul.f32 %v897_v10, %v2766_v58  ;;  %v1015_v59 = vmul.f32 0.7978846, %v988_v63 }
 0x144   : > { %v1189_v27 = vsel %vm1170_vm0, %v2795_v19, 0.0  ;;  %v840_v57 = vadd.f32 %v813_v49, %v2440_v21  ;;  %v2812_v47 = vmul.f32 0.044715, %v919_v2  ;;  %v899_v8 = vmul.f32 %v2792_v40, %v2792_v40 }
 0x145   : > { %1190 = vadd.xlane.f32.xlu0 %v1189_v27  ;;  %v1016_v6 = vmul.f32 0.7978846, %v989_v56  ;;  %v963_v5 = vmul.f32 0.044715, %v2659_v31  ;;  %v2817_v38 = vmul.f32 0.044715, %v922_v61  ;;  %v923_v3 = vmul.f32 %v896_v36, %v2786_v52 }
 0x146   : > { %1834 = vtanh.f32 %v1015_v59  ;;  %v2821_v39 = vadd.f32 %v2473_v28, %v840_v57  ;;  %v935_v29 = vmul.f32 0.5, %v2562_v24  ;;  %v964_v37 = vmul.f32 0.044715, %v2632_v0 }
 0x147   : > { %1836 = vtanh.f32 %v1016_v6  ;;  %v990_v21 = vadd.f32 %v963_v5, %v2602_v7  ;;  %v915_v50 = vmul.f32 %v888_v30, %v2727_v41  ;;  %v2827_v10 = vmul.f32 0.044715, %v921_v46 }
 0x148   : > { %v2829_v31 = vmul.f32 0.044715, %v924_v20  ;;  %v965_v53 = vmul.f32 0.044715, %v2703_v26  ;;  %v2833_v11 = vmul.f32 %v899_v8, %v2792_v40  ;;  %v991_v2 = vadd.f32 %v964_v37, %v2583_v15 }
 0x149   : > { %v1017_v28 = vmul.f32 0.7978846, %v990_v21  ;;  %v966_v24 = vmul.f32 0.044715, %v2662_v44  ;;  %v2837_v61 = vmul.f32 0.044715, %v923_v3  ;;  %v898_v49 = vmul.f32 %v2821_v39, %v2821_v39 }
 0x14a   : > { %v2840_v0 = vmul.f32 0.5, %v2602_v7  ;;  %v992_v30 = vadd.f32 %v965_v53, %v2642_v43  ;;  %v967_v17 = vmul.f32 0.044715, %v2724_v1  ;;  %v1018_v36 = vmul.f32 0.7978846, %v991_v2 }
 0x14b   : > { %1838 = vtanh.f32 %v1017_v28  ;;  %v993_v26 = vadd.f32 %v966_v24, %v2605_v18  ;;  %v968_v63 = vmul.f32 0.044715, %v2718_v51  ;;  %v2849_v44 = vmul.f32 0.5, %v2583_v15 }
 0x14c   : > { %v1019_v46 = vmul.f32 0.7978846, %v992_v30  ;;  %v994_v7 = vadd.f32 %v967_v17, %v2653_v22  ;;  %1840 = vtanh.f32 %v1018_v36  ;;  %v969_v1 = vmul.f32 0.044715, %v915_v50  ;;  %v1124_v17 = vld [vmem:[%s2616_s7 + $0x40] sm:$0xff] }
 0x14d   : > { %v1020_v56 = vmul.f32 0.7978846, %v993_v26  ;;  %v995_v20 = vadd.f32 %v968_v63, %v2645_v42  ;;  %v2854_v27 = vmul.f32 0.5, %v2642_v43  ;;  %v970_v59 = vmul.f32 0.044715, %v2742_v35  ;;  %v1123_v35 = vld [vmem:[%s2616_s7 + $0x38] sm:$0xff] }
 0x14e   : > { %1842 = vtanh.f32 %v1019_v46  ;;  %v1021_v51 = vmul.f32 0.7978846, %v994_v7  ;;  %v2858_v57 = vmul.f32 0.5, %v2605_v18  ;;  %v996_v8 = vadd.f32 %v969_v1, %v2727_v41 }
 0x14f   : > { %1844 = vtanh.f32 %v1020_v56  ;;  %v1022_v15 = vmul.f32 0.7978846, %v995_v20  ;;  %v925_v5 = vmul.f32 %v898_v49, %v2821_v39  ;;  %v997_v3 = vadd.f32 %v970_v59, %v2680_v45  ;;  %v1125_v20 = vld [vmem:[%s2616_s7 + $0x48] sm:$0xff] }
 0x150   : > { %v1835_v6 = vpop.eup %1834  ;;  %1846 = vtanh.f32 %v1021_v51  ;;  %v998_v43 = vadd.f32 %v2774_v62, %v2694_v32  ;;  %v1023_v18 = vmul.f32 0.7978846, %v996_v8  ;;  %v999_v50 = vadd.f32 %v2770_v33, %v2686_v23 }
 0x151   : > { %v1837_v21 = vpop.eup %1836  ;;  %v1069_v37 = vadd.f32 1.0, %v1835_v6  ;;  %1848 = vtanh.f32 %v1022_v15  ;;  %v940_v28 = vmul.f32 0.5, %v2653_v22  ;;  %v1024_v2 = vmul.f32 0.7978846, %v997_v3 }
 0x152   : > { %v1070_v53 = vadd.f32 1.0, %v1837_v21  ;;  %v1025_v24 = vmul.f32 0.7978846, %v998_v43  ;;  %1850 = vtanh.f32 %v1023_v18  ;;  %v1026_v36 = vmul.f32 0.7978846, %v999_v50 }
 0x153   : > { %v1096_v30 = vmul.f32 %v1069_v37, %v2805_v13  ;;  %v1000_v62 = vadd.f32 %v2812_v47, %v2730_v48  ;;  %v941_v63 = vmul.f32 0.5, %v2645_v42  ;;  %1852 = vtanh.f32 %v1024_v2 }
 0x154   : > { %v1097_v26 = vmul.f32 %v1070_v53, %v935_v29  ;;  %v1001_v33 = vadd.f32 %v2801_v4, %v2697_v25  ;;  %v2878_v46 = vmul.f32 0.044715, %v925_v5  ;;  %1854 = vtanh.f32 %v1025_v24  ;;  %v1126_v5 = vld [vmem:[%s2616_s7 + $0x50] sm:$0xff]  ;;  %v1128_v24 = vld [vmem:[%s2616_s7 + $0x60] sm:$0xff] }
 0x155   : > { %v1839_v49 = vpop.eup %1838  ;;  %v2876_v22 = vadd.f32 %v1123_v35, %v1096_v30  ;;  %v1027_v13 = vmul.f32 0.7978846, %v1000_v62  ;;  %1856 = vtanh.f32 %v1026_v36  ;;  %v942_v4 = vmul.f32 0.5, %v2727_v41  ;;  %v1129_v36 = vld [vmem:[%s2616_s7 + $0x68] sm:$0xff] }
 0x156   : > { %v2880_v7 = vadd.f32 %v1124_v17, %v1097_v26  ;;  %v1071_v56 = vadd.f32 1.0, %v1839_v49  ;;  %v1028_v47 = vmul.f32 0.7978846, %v1001_v33  ;;  %v1841_v29 = vpop.eup %1840  ;;  %v1002_v1 = vadd.f32 %v2827_v10, %v2763_v16 }
 0x157   : > { %v1192_v42 = vsel %vm1170_vm0, %v2876_v22, 0.0  ;;  %1858 = vtanh.f32 %v1027_v13  ;;  %v1072_v8 = vadd.f32 1.0, %v1841_v29  ;;  %v943_v41 = vmul.f32 0.5, %v2680_v45  ;;  %v1130_v29 = vld [vmem:[%s2616_s7 + $0x70] sm:$0xff] }
 0x158   : > { %v1843_v51 = vpop.eup %1842  ;;  %1193 = vadd.xlane.f32.xlu1 %v1192_v42  ;;  %v1195_v59 = vsel %vm1170_vm0, %v2880_v7, 0.0  ;;  %v1098_v15 = vmul.f32 %v1071_v56, %v2840_v0  ;;  %1860 = vtanh.f32 %v1028_v47  ;;  %v1029_v43 = vmul.f32 0.7978846, %v1002_v1  ;;  %v1127_v0 = vld [vmem:[%s2616_s7 + $0x58] sm:$0xff] }
 0x159   : > { %v1845_v6 = vpop.eup %1844  ;;  %1196 = vadd.xlane.f32.xlu0 %v1195_v59  ;;  %v1073_v3 = vadd.f32 1.0, %v1843_v51  ;;  %v1003_v10 = vadd.f32 %v2817_v38, %v2733_v12  ;;  %v1099_v35 = vmul.f32 %v1072_v8, %v2849_v44  ;;  %v1004_v50 = vadd.f32 %v2837_v61, %v2786_v52 }
 0x15a   : > { %v1847_v21 = vpop.eup %1846  ;;  %v2895_v37 = vadd.f32 %v1125_v20, %v1098_v15  ;;  %v1074_v18 = vadd.f32 1.0, %v1845_v6  ;;  %1862 = vtanh.f32 %v1029_v43  ;;  %v944_v8 = vmul.f32 0.5, %v2694_v32 }
 0x15b   : > { %v1849_v53 = vpop.eup %1848  ;;  %v1100_v2 = vmul.f32 %v1073_v3, %v2854_v27  ;;  %v1075_v45 = vadd.f32 1.0, %v1847_v21  ;;  %v1030_v30 = vmul.f32 0.7978846, %v1003_v10  ;;  %v2905_v17 = vadd.f32 %v1126_v5, %v1099_v35  ;;  %v1132_v21 = vld [vmem:[%s2616_s7 + $0x80] sm:$0xff] }
 0x15c   : > { %v1198_v38 = vsel %vm1170_vm0, %v2895_v37, 0.0  ;;  %v1101_v44 = vmul.f32 %v1074_v18, %v2858_v57  ;;  %v1076_v62 = vadd.f32 1.0, %v1849_v53  ;;  %v1851_v26 = vpop.eup %1850  ;;  %v1031_v33 = vmul.f32 0.7978846, %v1004_v50  ;;  %v1133_v50 = vld [vmem:[%s2616_s7 + $0x88] sm:$0xff] }
 0x15d   : > { %1199 = vadd.xlane.f32.xlu1 %v1198_v38  ;;  %v2909_v61 = vadd.f32 %v1127_v0, %v1100_v2  ;;  %v1102_v27 = vmul.f32 %v1075_v45, %v940_v28  ;;  %1864 = vtanh.f32 %v1030_v30  ;;  %v1853_v49 = vpop.eup %1852  ;;  %v1201_v13 = vsel %vm1170_vm0, %v2905_v17, 0.0  ;;  %v1131_v28 = vld [vmem:[%s2616_s7 + $0x78] sm:$0xff] }
 0x15e   : > { %v2913_v56 = vadd.f32 %v1128_v24, %v1101_v44  ;;  %v1103_v47 = vmul.f32 %v1076_v62, %v941_v63  ;;  %v1077_v42 = vadd.f32 1.0, %v1851_v26  ;;  %v1855_v57 = vpop.eup %1854  ;;  %1202 = vadd.xlane.f32.xlu0 %v1201_v13  ;;  %v1078_v51 = vadd.f32 1.0, %v1853_v49  ;;  %v1134_v44 = vld [vmem:[%s2616_s7 + $0x90] sm:$0xff] }
 0x15f   : > { %v1204_v20 = vsel %vm1170_vm0, %v2909_v61, 0.0  ;;  %v2918_v1 = vadd.f32 %v1129_v36, %v1102_v27  ;;  %1866 = vtanh.f32 %v1031_v33  ;;  %v1857_v59 = vpop.eup %1856  ;;  %v1079_v6 = vadd.f32 1.0, %v1855_v57 }
 0x160   : > { %v1104_v15 = vmul.f32 %v1077_v42, %v942_v4  ;;  %v945_v63 = vmul.f32 0.5, %v2686_v23  ;;  %v1207_v3 = vsel %vm1170_vm0, %v2913_v56, 0.0  ;;  %v2925_v43 = vadd.f32 %v1130_v29, %v1103_v47 }
 0x161   : > { %v1859_v5 = vpop.eup %1858  ;;  %1205 = vadd.xlane.f32.xlu1 %v1204_v20  ;;  %v1105_v10 = vmul.f32 %v1078_v51, %v943_v41  ;;  %v1080_v35 = vadd.f32 1.0, %v1857_v59  ;;  %v1210_v4 = vsel %vm1170_vm0, %v2918_v1, 0.0  ;;  %v1106_v32 = vmul.f32 %v1079_v6, %v944_v8  ;;  %v1136_v59 = vld [vmem:[%s2616_s7 + $0xa0] sm:$0xff] }
 0x162   : > { %v1861_v0 = vpop.eup %1860  ;;  %v2930_v18 = vadd.f32 %v1131_v28, %v1104_v15  ;;  %v1081_v23 = vadd.f32 1.0, %v1859_v5  ;;  %1208 = vadd.xlane.f32.xlu0 %v1207_v3  ;;  %v946_v53 = vmul.f32 0.5, %v2730_v48  ;;  %v1005_v2 = vadd.f32 %v2829_v31, %v2766_v58  ;;  %v1135_v31 = vld [vmem:[%s2616_s7 + $0x98] sm:$0xff] }
 0x163   : > { %v980_v41 = vmul.f32 0.044715, %v2833_v11  ;;  %v2937_v24 = vadd.f32 %v1132_v21, %v1105_v10  ;;  %v1107_v45 = vmul.f32 %v1080_v35, %v945_v63  ;;  %v2939_v38 = vadd.f32 %v1133_v50, %v1106_v32  ;;  %v1138_v50 = vld [vmem:[%s2616_s7 + $0xb0] sm:$0xff] }
 0x164   : > { %v1863_v30 = vpop.eup %1862  ;;  %v1108_v36 = vmul.f32 %v1081_v23, %v946_v53  ;;  %v1082_v62 = vadd.f32 1.0, %v1861_v0  ;;  %v1032_v26 = vmul.f32 0.7978846, %v1005_v2  ;;  %v1213_v27 = vsel %vm1170_vm0, %v2925_v43, 0.0 }
 0x165   : > { %1211 = vadd.xlane.f32.xlu1 %v1210_v4  ;;  %v1216_v48 = vsel %vm1170_vm0, %v2930_v18, 0.0  ;;  %v1083_v33 = vadd.f32 1.0, %v1863_v30  ;;  %v1006_v11 = vadd.f32 %v2878_v46, %v2821_v39  ;;  %v947_v13 = vmul.f32 0.5, %v2697_v25 }
 0x166   : > { %1214 = vadd.xlane.f32.xlu0 %v1213_v27  ;;  %1868 = vtanh.f32 %v1032_v26  ;;  %v1219_v47 = vsel %vm1170_vm0, %v2937_v24, 0.0  ;;  %v2952_v29 = vadd.f32 %v1134_v44, %v1107_v45  ;;  %v948_v42 = vmul.f32 0.5, %v2763_v16  ;;  %v1137_v16 = vld [vmem:[%s2616_s7 + $0xa8] sm:$0xff]  ;;  %v1140_v44 = vld [vmem:[%s2616_s7 + $0xc0] sm:$0xff] }
 0x167   : > { %v1865_v49 = vpop.eup %1864  ;;  %v1033_v57 = vmul.f32 0.7978846, %v1006_v11  ;;  %v1222_v28 = vsel %vm1170_vm0, %v2939_v38, 0.0  ;;  %v2957_v46 = vadd.f32 %v1135_v31, %v1108_v36  ;;  %v1109_v51 = vmul.f32 %v1082_v62, %v947_v13 }
 0x168   : > { %v1007_v25 = vadd.f32 %v980_v41, %v2792_v40  ;;  %v1110_v15 = vmul.f32 %v1083_v33, %v948_v42  ;;  %v1084_v8 = vadd.f32 1.0, %v1865_v49  ;;  %v949_v5 = vmul.f32 0.5, %v2733_v12  ;;  %v1139_v12 = vld [vmem:[%s2616_s7 + $0xb8] sm:$0xff]  ;;  %v1141_v33 = vld [vmem:[%s2616_s7 + $0xc8] sm:$0xff] }
 0x169   : > { %v1867_v20 = vpop.eup %1866  ;;  %1217 = vadd.xlane.f32.xlu1 %v1216_v48  ;;  %1870 = vtanh.f32 %v1033_v57  ;;  %v950_v3 = vmul.f32 0.5, %v2786_v52  ;;  %v1225_v10 = vsel %vm1170_vm0, %v2952_v29, 0.0  ;;  %v2966_v21 = vadd.f32 %v1136_v59, %v1109_v51 }
 0x16a   : > { %v1085_v6 = vadd.f32 1.0, %v1867_v20  ;;  %1220 = vadd.xlane.f32.xlu0 %v1219_v47  ;;  %v1034_v63 = vmul.f32 0.7978846, %v1007_v25  ;;  %v1228_v35 = vsel %vm1170_vm0, %v2957_v46, 0.0  ;;  %v2970_v0 = vadd.f32 %v1137_v16, %v1110_v15 }
 0x16b   : > { %v1111_v4 = vmul.f32 %v1084_v8, %v949_v5  ;;  %v1231_v52 = vsel %vm1170_vm0, %v2966_v21, 0.0  ;;  %v951_v53 = vmul.f32 0.5, %v2766_v58  ;;  %v952_v26 = vmul.f32 0.5, %v2821_v39  ;;  %v1142_v39 = vld [vmem:[%s2616_s7 + $0xd0] sm:$0xff]  ;;  %s1934_s7 = scalar_lea.vmem %s1933_s6, 6912 }
 0x16c   : > { %1872 = vtanh.f32 %v1034_v63  ;;  %v1112_v32 = vmul.f32 %v1085_v6, %v950_v3  ;;  %v1234_v2 = vsel %vm1170_vm0, %v2970_v0, 0.0  ;;  %v953_v13 = vmul.f32 0.5, %v2792_v40  ;;  %p1936_p2 = scmp.lt.s32.totalorder %s1934_s7, %s1928_s26 }
 0x16d   : > { %1223 = vadd.xlane.f32.xlu1 %v1222_v28  ;;  %v2979_v41 = vadd.f32 %v1138_v50, %v1111_v4 }
 0x16e   : > { %1226 = vadd.xlane.f32.xlu0 %v1225_v10  ;;  %v2981_v45 = vadd.f32 %v1139_v12, %v1112_v32  ;;  %p1937_p3 = por %p1936_p2, %p1935_p1 }
 0x16f   : > { %v1237_v58 = vsel %vm1170_vm0, %v2979_v41, 0.0 }
 0x170   : > { %v1869_v23 = vpop.eup %1868  ;;  %v1240_v48 = vsel %vm1170_vm0, %v2981_v45, 0.0  ;;  %p1938_p5 = pnand %p1937_p3, %p1931_p0 }
 0x171   : > { %1229 = vadd.xlane.f32.xlu1 %v1228_v35  ;;  %v1086_v30 = vadd.f32 1.0, %v1869_v23 }
 0x172   : > { %1232 = vadd.xlane.f32.xlu0 %v1231_v52 }
 0x173   : > { %v1871_v36 = vpop.eup %1870  ;;  %v1113_v62 = vmul.f32 %v1086_v30, %v951_v53 }
 0x174   : > { %v1087_v27 = vadd.f32 1.0, %v1871_v36 }
 0x175   : > { %1235 = vadd.xlane.f32.xlu1 %v1234_v2  ;;  %v2989_v31 = vadd.f32 %v1140_v44, %v1113_v62 }
 0x176   : > { %v1873_v11 = vpop.eup %1872  ;;  %1238 = vadd.xlane.f32.xlu0 %v1237_v58  ;;  %v1114_v49 = vmul.f32 %v1087_v27, %v952_v26 }
 0x177   : > { %v1088_v47 = vadd.f32 1.0, %v1873_v11  ;;  %v1243_v57 = vsel %vm1170_vm0, %v2989_v31, 0.0 }
 0x178   : > { %v2993_v42 = vadd.f32 %v1141_v33, %v1114_v49 }
 0x179   : > { %1241 = vadd.xlane.f32.xlu1 %v1240_v48  ;;  %v1115_v20 = vmul.f32 %v1088_v47, %v953_v13 }
 0x17a   : > { %1244 = vadd.xlane.f32.xlu0 %v1243_v57  ;;  %v1246_v28 = vsel %vm1170_vm0, %v2993_v42, 0.0 }
 0x17b   : > { %v3000_v51 = vadd.f32 %v1142_v39, %v1115_v20 }
 0x17d   : > { %1247 = vadd.xlane.f32.xlu1 %v1246_v28  ;;  %v1249_v25 = vsel %vm1170_vm0, %v3000_v51, 0.0 }
 0x17e   : > { %1250 = vadd.xlane.f32.xlu0 %v1249_v25 }
 0x1bc   : > { %v1173_v40 = vpop.xlane.xlu1 %1172 }
 0x1bd   : > { %v1253_v59 = vmul.f32 0.03125, %v1173_v40 }
 0x1bf   : > { %v1176_v15 = vpop.xlane.xlu0 %1175  ;;  %v3005_v8 = vsub.f32 %v2656_v54, %v1253_v59 }
 0x1c0   : > { %v1254_v6 = vmul.f32 0.03125, %v1176_v15 }
 0x1c1   : > { %v1307_v63 = vmul.f32 %v3005_v8, %v3005_v8 }
 0x1c2   : > { %v3008_v16 = vsub.f32 %v2668_v55, %v1254_v6 }
 0x1c3   : > { %v1179_v5 = vpop.xlane.xlu0 %1178  ;;  %v1334_v10 = vsel %vm1170_vm0, %v1307_v63, 0.0 }
 0x1c4   : > { %v1255_v3 = vmul.f32 0.03125, %v1179_v5  ;;  %v1308_v35 = vmul.f32 %v3008_v16, %v3008_v16  ;;  %1335 = vadd.xlane.f32.xlu1 %v1334_v10 }
 0x1c6   : > { %v3016_v4 = vsub.f32 %v2691_v9, %v1255_v3  ;;  %v1337_v54 = vsel %vm1170_vm0, %v1308_v35, 0.0  ;;  %v1182_v32 = vpop.xlane.xlu1 %1181 }
 0x1c7   : > { %1338 = vadd.xlane.f32.xlu0 %v1337_v54  ;;  %v1256_v55 = vmul.f32 0.03125, %v1182_v32 }
 0x1c8   : > { %v1309_v50 = vmul.f32 %v3016_v4, %v3016_v4  ;;  %v1185_v12 = vpop.xlane.xlu0 %1184 }
 0x1c9   : > { %v3022_v23 = vsub.f32 %v2720_v34, %v1256_v55  ;;  %v1257_v52 = vmul.f32 0.03125, %v1185_v12 }
 0x1ca   : > { %v1340_v53 = vsel %vm1170_vm0, %v1309_v50, 0.0 }
 0x1cb   : > { %1341 = vadd.xlane.f32.xlu1 %v1340_v53  ;;  %v3026_v2 = vsub.f32 %v2737_v60, %v1257_v52  ;;  %v1310_v9 = vmul.f32 %v3022_v23, %v3022_v23 }
 0x1cd   : > { %v1188_v30 = vpop.xlane.xlu1 %1187  ;;  %v1343_v36 = vsel %vm1170_vm0, %v1310_v9, 0.0  ;;  %v1311_v62 = vmul.f32 %v3026_v2, %v3026_v2 }
 0x1ce   : > { %v1258_v44 = vmul.f32 0.03125, %v1188_v30  ;;  %1344 = vadd.xlane.f32.xlu0 %v1343_v36 }
 0x1cf   : > { %v1346_v26 = vsel %vm1170_vm0, %v1311_v62, 0.0 }
 0x1d0   : > { %v3034_v34 = vsub.f32 %v2768_v14, %v1258_v44  ;;  %1347 = vadd.xlane.f32.xlu1 %v1346_v26 }
 0x1d2   : > { %v1191_v27 = vpop.xlane.xlu0 %1190  ;;  %v1312_v60 = vmul.f32 %v3034_v34, %v3034_v34 }
 0x1d3   : > { %v1259_v58 = vmul.f32 0.03125, %v1191_v27 }
 0x1d4   : > { %v1349_v48 = vsel %vm1170_vm0, %v1312_v60, 0.0 }
 0x1d5   : > { %v3041_v33 = vsub.f32 %v2795_v19, %v1259_v58  ;;  %1350 = vadd.xlane.f32.xlu0 %v1349_v48 }
 0x1d7   : > { %v1313_v11 = vmul.f32 %v3041_v33, %v3041_v33 }
 0x1d9   : > { %v1352_v14 = vsel %vm1170_vm0, %v1313_v11, 0.0 }
 0x1da   : > { %1353 = vadd.xlane.f32.xlu1 %v1352_v14 }
 0x1e5   : > { %v1194_v49 = vpop.xlane.xlu1 %1193 }
 0x1e6   : > { %v1260_v13 = vmul.f32 0.03125, %v1194_v49  ;;  %v1197_v47 = vpop.xlane.xlu0 %1196 }
 0x1e7   : > { %v1261_v39 = vmul.f32 0.03125, %v1197_v47 }
 0x1e8   : > { %v3047_v57 = vsub.f32 %v2876_v22, %v1260_v13 }
 0x1e9   : > { %v3050_v20 = vsub.f32 %v2880_v7, %v1261_v39 }
 0x1ea   : > { %v1200_v28 = vpop.xlane.xlu1 %1199  ;;  %v1314_v19 = vmul.f32 %v3047_v57, %v3047_v57 }
 0x1eb   : > { %v1262_v25 = vmul.f32 0.03125, %v1200_v28  ;;  %v1315_v40 = vmul.f32 %v3050_v20, %v3050_v20  ;;  %v1203_v59 = vpop.xlane.xlu0 %1202 }
 0x1ec   : > { %v1355_v15 = vsel %vm1170_vm0, %v1314_v19, 0.0  ;;  %v1263_v63 = vmul.f32 0.03125, %v1203_v59 }
 0x1ed   : > { %v3058_v6 = vsub.f32 %v2895_v37, %v1262_v25  ;;  %1356 = vadd.xlane.f32.xlu0 %v1355_v15  ;;  %v1358_v22 = vsel %vm1170_vm0, %v1315_v40, 0.0 }
 0x1ee   : > { %v1206_v7 = vpop.xlane.xlu1 %1205  ;;  %1359 = vadd.xlane.f32.xlu1 %v1358_v22  ;;  %v3062_v5 = vsub.f32 %v2905_v17, %v1263_v63 }
 0x1ef   : > { %v1264_v3 = vmul.f32 0.03125, %v1206_v7  ;;  %v1316_v10 = vmul.f32 %v3058_v6, %v3058_v6  ;;  %v1209_v35 = vpop.xlane.xlu0 %1208 }
 0x1f0   : > { %v1265_v32 = vmul.f32 0.03125, %v1209_v35  ;;  %v1317_v55 = vmul.f32 %v3062_v5, %v3062_v5 }
 0x1f1   : > { %v3067_v54 = vsub.f32 %v2909_v61, %v1264_v3  ;;  %v1361_v37 = vsel %vm1170_vm0, %v1316_v10, 0.0 }
 0x1f2   : > { %v1212_v50 = vpop.xlane.xlu1 %1211  ;;  %1362 = vadd.xlane.f32.xlu0 %v1361_v37  ;;  %v3073_v12 = vsub.f32 %v2913_v56, %v1265_v32  ;;  %v1364_v52 = vsel %vm1170_vm0, %v1317_v55, 0.0 }
 0x1f3   : > { %v1266_v17 = vmul.f32 0.03125, %v1212_v50  ;;  %v1318_v53 = vmul.f32 %v3067_v54, %v3067_v54  ;;  %1365 = vadd.xlane.f32.xlu1 %v1364_v52  ;;  %v1215_v61 = vpop.xlane.xlu0 %1214 }
 0x1f4   : > { %v1267_v30 = vmul.f32 0.03125, %v1215_v61  ;;  %v1319_v36 = vmul.f32 %v3073_v12, %v3073_v12 }
 0x1f5   : > { %v3079_v9 = vsub.f32 %v2918_v1, %v1266_v17  ;;  %v1367_v44 = vsel %vm1170_vm0, %v1318_v53, 0.0 }
 0x1f6   : > { %v1218_v62 = vpop.xlane.xlu1 %1217  ;;  %1368 = vadd.xlane.f32.xlu0 %v1367_v44  ;;  %v3085_v56 = vsub.f32 %v2925_v43, %v1267_v30  ;;  %v1370_v27 = vsel %vm1170_vm0, %v1319_v36, 0.0 }
 0x1f7   : > { %v1268_v26 = vmul.f32 0.03125, %v1218_v62  ;;  %v1320_v60 = vmul.f32 %v3079_v9, %v3079_v9  ;;  %1371 = vadd.xlane.f32.xlu1 %v1370_v27  ;;  %v1221_v1 = vpop.xlane.xlu0 %1220 }
 0x1f8   : > { %v1269_v48 = vmul.f32 0.03125, %v1221_v1  ;;  %v1321_v14 = vmul.f32 %v3085_v56, %v3085_v56 }
 0x1f9   : > { %v3091_v58 = vsub.f32 %v2930_v18, %v1268_v26  ;;  %v1373_v11 = vsel %vm1170_vm0, %v1320_v60, 0.0 }
 0x1fa   : > { %v1224_v49 = vpop.xlane.xlu1 %1223  ;;  %1374 = vadd.xlane.f32.xlu0 %v1373_v11  ;;  %v3097_v43 = vsub.f32 %v2937_v24, %v1269_v48  ;;  %v1376_v47 = vsel %vm1170_vm0, %v1321_v14, 0.0 }
 0x1fb   : > { %v1270_v13 = vmul.f32 0.03125, %v1224_v49  ;;  %v1322_v39 = vmul.f32 %v3091_v58, %v3091_v58  ;;  %1377 = vadd.xlane.f32.xlu1 %v1376_v47  ;;  %v1227_v18 = vpop.xlane.xlu0 %1226 }
 0x1fc   : > { %v1271_v19 = vmul.f32 0.03125, %v1227_v18  ;;  %v1323_v40 = vmul.f32 %v3097_v43, %v3097_v43 }
 0x1fd   : > { %v3103_v28 = vsub.f32 %v2939_v38, %v1270_v13  ;;  %v1379_v25 = vsel %vm1170_vm0, %v1322_v39, 0.0 }
 0x1fe   : > { %v1230_v59 = vpop.xlane.xlu1 %1229  ;;  %1380 = vadd.xlane.f32.xlu0 %v1379_v25  ;;  %v3109_v24 = vsub.f32 %v2952_v29, %v1271_v19  ;;  %v1382_v63 = vsel %vm1170_vm0, %v1323_v40, 0.0 }
 0x1ff   : > { %v1272_v15 = vmul.f32 0.03125, %v1230_v59  ;;  %v1324_v22 = vmul.f32 %v3103_v28, %v3103_v28  ;;  %1383 = vadd.xlane.f32.xlu1 %v1382_v63  ;;  %v1233_v38 = vpop.xlane.xlu0 %1232 }
 0x200   : > { %v1273_v3 = vmul.f32 0.03125, %v1233_v38  ;;  %v1325_v35 = vmul.f32 %v3109_v24, %v3109_v24 }
 0x201   : > { %v3115_v7 = vsub.f32 %v2957_v46, %v1272_v15  ;;  %v1385_v10 = vsel %vm1170_vm0, %v1324_v22, 0.0 }
 0x202   : > { %v1236_v32 = vpop.xlane.xlu1 %1235  ;;  %1386 = vadd.xlane.f32.xlu0 %v1385_v10  ;;  %v3121_v29 = vsub.f32 %v2966_v21, %v1273_v3  ;;  %v1388_v55 = vsel %vm1170_vm0, %v1325_v35, 0.0 }
 0x203   : > { %v1274_v37 = vmul.f32 0.03125, %v1236_v32  ;;  %v1326_v50 = vmul.f32 %v3115_v7, %v3115_v7  ;;  %1389 = vadd.xlane.f32.xlu1 %v1388_v55  ;;  %v1239_v46 = vpop.xlane.xlu0 %1238 }
 0x204   : > { %v1275_v52 = vmul.f32 0.03125, %v1239_v46  ;;  %v1327_v61 = vmul.f32 %v3121_v29, %v3121_v29 }
 0x205   : > { %v3127_v17 = vsub.f32 %v2970_v0, %v1274_v37  ;;  %v1391_v53 = vsel %vm1170_vm0, %v1326_v50, 0.0 }
 0x206   : > { %v1242_v30 = vpop.xlane.xlu1 %1241  ;;  %1392 = vadd.xlane.f32.xlu0 %v1391_v53  ;;  %v3133_v21 = vsub.f32 %v2979_v41, %v1275_v52  ;;  %v1394_v36 = vsel %vm1170_vm0, %v1327_v61, 0.0  ;;  %v3170_v61 = vld [vmem:[%s3375_s2 + $0x4] ss:$0 sm:$0xff] }
 0x207   : > { %v1276_v44 = vmul.f32 0.03125, %v1242_v30  ;;  %v1328_v62 = vmul.f32 %v3127_v17, %v3127_v17  ;;  %1395 = vadd.xlane.f32.xlu1 %v1394_v36  ;;  %v1245_v0 = vpop.xlane.xlu0 %1244 }
 0x208   : > { %v1277_v27 = vmul.f32 0.03125, %v1245_v0  ;;  %v1329_v1 = vmul.f32 %v3133_v21, %v3133_v21  ;;  %v3178_v0 = vld [vmem:[%s3375_s2 + $0x5] ss:$0 sm:$0xff] }
 0x209   : > { %v3139_v26 = vsub.f32 %v2981_v45, %v1276_v44  ;;  %v1397_v60 = vsel %vm1170_vm0, %v1328_v62, 0.0 }
 0x20a   : > { %v1248_v48 = vpop.xlane.xlu1 %1247  ;;  %1398 = vadd.xlane.f32.xlu0 %v1397_v60  ;;  %v3145_v41 = vsub.f32 %v2989_v31, %v1277_v27  ;;  %v1400_v14 = vsel %vm1170_vm0, %v1329_v1, 0.0 }
 0x20b   : > { %v1278_v11 = vmul.f32 0.03125, %v1248_v48  ;;  %v1330_v49 = vmul.f32 %v3139_v26, %v3139_v26  ;;  %1401 = vadd.xlane.f32.xlu1 %v1400_v14  ;;  %v1251_v45 = vpop.xlane.xlu0 %1250 }
 0x20c   : > { %v1279_v47 = vmul.f32 0.03125, %v1251_v45  ;;  %v1331_v18 = vmul.f32 %v3145_v41, %v3145_v41 }
 0x20d   : > { %v3151_v13 = vsub.f32 %v2993_v42, %v1278_v11  ;;  %v1403_v39 = vsel %vm1170_vm0, %v1330_v49, 0.0 }
 0x20e   : > { %1404 = vadd.xlane.f32.xlu0 %v1403_v39  ;;  %v3157_v31 = vsub.f32 %v3000_v51, %v1279_v47  ;;  %v1406_v19 = vsel %vm1170_vm0, %v1331_v18, 0.0 }
 0x20f   : > { %v1332_v25 = vmul.f32 %v3151_v13, %v3151_v13  ;;  %1407 = vadd.xlane.f32.xlu1 %v1406_v19 }
 0x210   : > { %v1333_v42 = vmul.f32 %v3157_v31, %v3157_v31 }
 0x211   : > { %v1409_v40 = vsel %vm1170_vm0, %v1332_v25, 0.0 }
 0x212   : > { %1410 = vadd.xlane.f32.xlu0 %v1409_v40  ;;  %v1412_v59 = vsel %vm1170_vm0, %v1333_v42, 0.0 }
 0x213   : > { %1413 = vadd.xlane.f32.xlu1 %v1412_v59 }
 0x251   : > { %v1336_v15 = vpop.xlane.xlu1 %1335 }
 0x252   : > { %v1415_v63 = vmul.f32 0.03125, %v1336_v15 }
 0x254   : > { %v1339_v51 = vpop.xlane.xlu0 %1338  ;;  %v1442_v22 = vadd.f32 1e-05, %v1415_v63 }
 0x255   : > { %v1416_v38 = vmul.f32 0.03125, %v1339_v51 }
 0x256   : > { %1874 = vrsqrt.f32 %v1442_v22 }
 0x257   : > { %v1443_v3 = vadd.f32 1e-05, %v1416_v38 }
 0x258   : > { %v1342_v10 = vpop.xlane.xlu1 %1341 }
 0x259   : > { %1876 = vrsqrt.f32 %v1443_v3  ;;  %v1417_v35 = vmul.f32 0.03125, %v1342_v10 }
 0x25b   : > { %v1444_v32 = vadd.f32 1e-05, %v1417_v35  ;;  %v1345_v37 = vpop.xlane.xlu0 %1344 }
 0x25c   : > { %v1418_v55 = vmul.f32 0.03125, %v1345_v37 }
 0x25d   : > { %1878 = vrsqrt.f32 %v1444_v32  ;;  %v1348_v50 = vpop.xlane.xlu1 %1347 }
 0x25e   : > { %v1419_v46 = vmul.f32 0.03125, %v1348_v50  ;;  %v1445_v52 = vadd.f32 1e-05, %v1418_v55 }
 0x260   : > { %v1875_v53 = vpop.eup %1874  ;;  %v1446_v30 = vadd.f32 1e-05, %v1419_v46  ;;  %1880 = vrsqrt.f32 %v1445_v52 }
 0x261   : > { %v1496_v44 = vmul.f32 %v1875_v53, %v3005_v8 }
 0x262   : > { %v1351_v36 = vpop.xlane.xlu0 %1350  ;;  %1882 = vrsqrt.f32 %v1446_v30 }
 0x263   : > { %v1877_v62 = vpop.eup %1876  ;;  %v1420_v27 = vmul.f32 0.03125, %v1351_v36  ;;  %v1527_v60 = vmul.f32 %v3170_v61, %v1496_v44 }
 0x264   : > { %v1497_v1 = vmul.f32 %v1877_v62, %v3008_v16 }
 0x265   : > { %v1447_v48 = vadd.f32 1e-05, %v1420_v27  ;;  %v1558_v11 = vadd.f32 %v3178_v0, %v1527_v60 }
 0x266   : > { %v1528_v14 = vmul.f32 %v3170_v61, %v1497_v1 }
 0x267   : > { %v1879_v49 = vpop.eup %1878  ;;  %v1354_v8 = vpop.xlane.xlu1 %1353  ;;  %1884 = vrsqrt.f32 %v1447_v48  ;;  %1585 = vst.msk [vmem:[%s3184_s12] sm:$0xff] %vm1170_vm0, %v1558_v11 }
 0x268   : > { %v1559_v45 = vadd.f32 %v3178_v0, %v1528_v14  ;;  %v1498_v47 = vmul.f32 %v1879_v49, %v3016_v4  ;;  %v1421_v16 = vmul.f32 0.03125, %v1354_v8 }
 0x26a   : > { %1586 = vst.msk [vmem:[%s3184_s12 + $0x8] sm:$0xff] %vm1170_vm0, %v1559_v45  ;;  %v1529_v39 = vmul.f32 %v3170_v61, %v1498_v47  ;;  %v1448_v18 = vadd.f32 1e-05, %v1421_v16  ;;  %v1881_v19 = vpop.eup %1880 }
 0x26b   : > { %v1499_v40 = vmul.f32 %v1881_v19, %v3022_v23 }
 0x26c   : > { %v1560_v25 = vadd.f32 %v3178_v0, %v1529_v39  ;;  %1886 = vrsqrt.f32 %v1448_v18  ;;  %v1883_v42 = vpop.eup %1882 }
 0x26d   : > { %v1500_v4 = vmul.f32 %v1883_v42, %v3026_v2  ;;  %v1530_v59 = vmul.f32 %v3170_v61, %v1499_v40 }
 0x26e   : > { %1587 = vst.msk [vmem:[%s3184_s12 + $0x10] sm:$0xff] %vm1170_vm0, %v1560_v25 }
 0x26f   : > { %v1531_v15 = vmul.f32 %v3170_v61, %v1500_v4  ;;  %v1561_v63 = vadd.f32 %v3178_v0, %v1530_v59 }
 0x271   : > { %v1885_v51 = vpop.eup %1884  ;;  %v1562_v22 = vadd.f32 %v3178_v0, %v1531_v15  ;;  %1588 = vst.msk [vmem:[%s3184_s12 + $0x18] sm:$0xff] %vm1170_vm0, %v1561_v63 }
 0x272   : > { %v1501_v23 = vmul.f32 %v1885_v51, %v3034_v34 }
 0x273   : > { %1589 = vst.msk [vmem:[%s3184_s12 + $0x20] sm:$0xff] %vm1170_vm0, %v1562_v22 }
 0x274   : > { %v1532_v38 = vmul.f32 %v3170_v61, %v1501_v23 }
 0x276   : > { %v1887_v3 = vpop.eup %1886  ;;  %v1563_v2 = vadd.f32 %v3178_v0, %v1532_v38 }
 0x277   : > { %v1502_v10 = vmul.f32 %v1887_v3, %v3041_v33 }
 0x278   : > { %1590 = vst.msk [vmem:[%s3184_s12 + $0x28] sm:$0xff] %vm1170_vm0, %v1563_v2 }
 0x279   : > { %v1533_v35 = vmul.f32 %v3170_v61, %v1502_v10 }
 0x27a   : > { %v1357_v32 = vpop.xlane.xlu0 %1356 }
 0x27b   : > { %v1564_v37 = vadd.f32 %v3178_v0, %v1533_v35  ;;  %v1360_v55 = vpop.xlane.xlu1 %1359  ;;  %v1422_v50 = vmul.f32 0.03125, %v1357_v32 }
 0x27c   : > { %v1423_v46 = vmul.f32 0.03125, %v1360_v55 }
 0x27d   : > { %1591 = vst.msk [vmem:[%s3184_s12 + $0x30] sm:$0xff] %vm1170_vm0, %v1564_v37  ;;  %v1449_v34 = vadd.f32 1e-05, %v1422_v50 }
 0x27e   : > { %v1450_v52 = vadd.f32 1e-05, %v1423_v46 }
 0x27f   : > { %1888 = vrsqrt.f32 %v1449_v34  ;;  %v1363_v53 = vpop.xlane.xlu0 %1362 }
 0x280   : > { %1890 = vrsqrt.f32 %v1450_v52  ;;  %v1424_v30 = vmul.f32 0.03125, %v1363_v53  ;;  %v1366_v44 = vpop.xlane.xlu1 %1365 }
 0x281   : > { %v1425_v33 = vmul.f32 0.03125, %v1366_v44 }
 0x282   : > { %v1451_v36 = vadd.f32 1e-05, %v1424_v30 }
 0x283   : > { %v1369_v62 = vpop.xlane.xlu0 %1368  ;;  %v1452_v27 = vadd.f32 1e-05, %v1425_v33 }
 0x284   : > { %1892 = vrsqrt.f32 %v1451_v36  ;;  %v1426_v60 = vmul.f32 0.03125, %v1369_v62  ;;  %v1372_v1 = vpop.xlane.xlu1 %1371 }
 0x285   : > { %1894 = vrsqrt.f32 %v1452_v27  ;;  %v1427_v48 = vmul.f32 0.03125, %v1372_v1 }
 0x286   : > { %v1453_v11 = vadd.f32 1e-05, %v1426_v60 }
 0x287   : > { %v1375_v14 = vpop.xlane.xlu0 %1374  ;;  %v1454_v49 = vadd.f32 1e-05, %v1427_v48 }
 0x288   : > { %1896 = vrsqrt.f32 %v1453_v11  ;;  %v1428_v8 = vmul.f32 0.03125, %v1375_v14  ;;  %v1378_v47 = vpop.xlane.xlu1 %1377 }
 0x289   : > { %v1889_v45 = vpop.eup %1888  ;;  %1898 = vrsqrt.f32 %v1454_v49  ;;  %v1429_v18 = vmul.f32 0.03125, %v1378_v47 }
 0x28a   : > { %v1891_v16 = vpop.eup %1890  ;;  %v1503_v39 = vmul.f32 %v1889_v45, %v3047_v57  ;;  %v1455_v19 = vadd.f32 1e-05, %v1428_v8 }
 0x28b   : > { %v1504_v25 = vmul.f32 %v1891_v16, %v3050_v20  ;;  %v1381_v40 = vpop.xlane.xlu0 %1380  ;;  %v1456_v4 = vadd.f32 1e-05, %v1429_v18 }
 0x28c   : > { %v1534_v42 = vmul.f32 %v3170_v61, %v1503_v39  ;;  %1900 = vrsqrt.f32 %v1455_v19  ;;  %v1430_v59 = vmul.f32 0.03125, %v1381_v40  ;;  %v1384_v63 = vpop.xlane.xlu1 %1383 }
 0x28d   : > { %v1535_v15 = vmul.f32 %v3170_v61, %v1504_v25  ;;  %1902 = vrsqrt.f32 %v1456_v4  ;;  %v1431_v57 = vmul.f32 0.03125, %v1384_v63 }
 0x28e   : > { %v1893_v51 = vpop.eup %1892  ;;  %v1565_v22 = vadd.f32 %v3178_v0, %v1534_v42  ;;  %v1457_v23 = vadd.f32 1e-05, %v1430_v59 }
 0x28f   : > { %v1566_v38 = vadd.f32 %v3178_v0, %v1535_v15  ;;  %v1505_v20 = vmul.f32 %v1893_v51, %v3058_v6  ;;  %v1387_v3 = vpop.xlane.xlu0 %1386  ;;  %v1895_v2 = vpop.eup %1894  ;;  %v1458_v10 = vadd.f32 1e-05, %v1431_v57 }
 0x290   : > { %1592 = vst.msk [vmem:[%s3184_s12 + $0x38] sm:$0xff] %vm1170_vm0, %v1565_v22  ;;  %1904 = vrsqrt.f32 %v1457_v23  ;;  %v1432_v35 = vmul.f32 0.03125, %v1387_v3  ;;  %v1506_v32 = vmul.f32 %v1895_v2, %v3062_v5  ;;  %v1390_v55 = vpop.xlane.xlu1 %1389 }
 0x291   : > { %1593 = vst.msk [vmem:[%s3184_s12 + $0x40] sm:$0xff] %vm1170_vm0, %v1566_v38  ;;  %v1536_v37 = vmul.f32 %v3170_v61, %v1505_v20  ;;  %1906 = vrsqrt.f32 %v1458_v10  ;;  %v1433_v46 = vmul.f32 0.03125, %v1390_v55 }
 0x292   : > { %v1897_v50 = vpop.eup %1896  ;;  %v1459_v34 = vadd.f32 1e-05, %v1432_v35  ;;  %v1537_v6 = vmul.f32 %v3170_v61, %v1506_v32 }
 0x293   : > { %v1567_v52 = vadd.f32 %v3178_v0, %v1536_v37  ;;  %v1507_v53 = vmul.f32 %v1897_v50, %v3067_v54  ;;  %v1393_v30 = vpop.xlane.xlu0 %1392  ;;  %v1899_v44 = vpop.eup %1898  ;;  %v1460_v33 = vadd.f32 1e-05, %v1433_v46 }
 0x294   : > { %1908 = vrsqrt.f32 %v1459_v34  ;;  %v1434_v5 = vmul.f32 0.03125, %v1393_v30  ;;  %v1568_v36 = vadd.f32 %v3178_v0, %v1537_v6  ;;  %v1508_v62 = vmul.f32 %v1899_v44, %v3073_v12  ;;  %v1396_v60 = vpop.xlane.xlu1 %1395 }
 0x295   : > { %1594 = vst.msk [vmem:[%s3184_s12 + $0x48] sm:$0xff] %vm1170_vm0, %v1567_v52  ;;  %v1538_v27 = vmul.f32 %v3170_v61, %v1507_v53  ;;  %1910 = vrsqrt.f32 %v1460_v33  ;;  %v1435_v48 = vmul.f32 0.03125, %v1396_v60 }
 0x296   : > { %v1901_v1 = vpop.eup %1900  ;;  %v1461_v11 = vadd.f32 1e-05, %v1434_v5  ;;  %1595 = vst.msk [vmem:[%s3184_s12 + $0x50] sm:$0xff] %vm1170_vm0, %v1568_v36  ;;  %v1539_v54 = vmul.f32 %v3170_v61, %v1508_v62 }
 0x297   : > { %v1569_v14 = vadd.f32 %v3178_v0, %v1538_v27  ;;  %v1509_v49 = vmul.f32 %v1901_v1, %v3079_v9  ;;  %v1399_v8 = vpop.xlane.xlu0 %1398  ;;  %v1903_v45 = vpop.eup %1902  ;;  %v1462_v12 = vadd.f32 1e-05, %v1435_v48 }
 0x298   : > { %1912 = vrsqrt.f32 %v1461_v11  ;;  %v1436_v47 = vmul.f32 0.03125, %v1399_v8  ;;  %v1570_v16 = vadd.f32 %v3178_v0, %v1539_v54  ;;  %v1510_v39 = vmul.f32 %v1903_v45, %v3085_v56  ;;  %v1402_v19 = vpop.xlane.xlu1 %1401 }
 0x299   : > { %1596 = vst.msk [vmem:[%s3184_s12 + $0x58] sm:$0xff] %vm1170_vm0, %v1569_v14  ;;  %v1540_v18 = vmul.f32 %v3170_v61, %v1509_v49  ;;  %1914 = vrsqrt.f32 %v1462_v12  ;;  %v1437_v40 = vmul.f32 0.03125, %v1402_v19 }
 0x29a   : > { %v1905_v25 = vpop.eup %1904  ;;  %v1463_v42 = vadd.f32 1e-05, %v1436_v47  ;;  %1597 = vst.msk [vmem:[%s3184_s12 + $0x60] sm:$0xff] %vm1170_vm0, %v1570_v16  ;;  %v1541_v9 = vmul.f32 %v3170_v61, %v1510_v39 }
 0x29b   : > { %v1571_v4 = vadd.f32 %v3178_v0, %v1540_v18  ;;  %v1511_v59 = vmul.f32 %v1905_v25, %v3091_v58  ;;  %v1405_v15 = vpop.xlane.xlu0 %1404  ;;  %v1907_v63 = vpop.eup %1906  ;;  %v1464_v56 = vadd.f32 1e-05, %v1437_v40 }
 0x29c   : > { %1916 = vrsqrt.f32 %v1463_v42  ;;  %v1438_v51 = vmul.f32 0.03125, %v1405_v15  ;;  %v1572_v22 = vadd.f32 %v3178_v0, %v1541_v9  ;;  %v1512_v57 = vmul.f32 %v1907_v63, %v3097_v43  ;;  %v1408_v38 = vpop.xlane.xlu1 %1407 }
 0x29d   : > { %1598 = vst.msk [vmem:[%s3184_s12 + $0x68] sm:$0xff] %vm1170_vm0, %v1571_v4  ;;  %v1542_v23 = vmul.f32 %v3170_v61, %v1511_v59  ;;  %1918 = vrsqrt.f32 %v1464_v56  ;;  %v1439_v3 = vmul.f32 0.03125, %v1408_v38 }
 0x29e   : > { %v1909_v20 = vpop.eup %1908  ;;  %v1465_v2 = vadd.f32 1e-05, %v1438_v51  ;;  %1599 = vst.msk [vmem:[%s3184_s12 + $0x70] sm:$0xff] %vm1170_vm0, %v1572_v22  ;;  %v1543_v58 = vmul.f32 %v3170_v61, %v1512_v57 }
 0x29f   : > { %v1573_v10 = vadd.f32 %v3178_v0, %v1542_v23  ;;  %v1513_v35 = vmul.f32 %v1909_v20, %v3103_v28  ;;  %v1411_v32 = vpop.xlane.xlu0 %1410  ;;  %v1911_v37 = vpop.eup %1910  ;;  %v1466_v43 = vadd.f32 1e-05, %v1439_v3 }
 0x2a0   : > { %1920 = vrsqrt.f32 %v1465_v2  ;;  %v1440_v55 = vmul.f32 0.03125, %v1411_v32  ;;  %v1574_v50 = vadd.f32 %v3178_v0, %v1543_v58  ;;  %v1514_v46 = vmul.f32 %v1911_v37, %v3109_v24  ;;  %v1414_v6 = vpop.xlane.xlu1 %1413 }
 0x2a1   : > { %1600 = vst.msk [vmem:[%s3184_s12 + $0x78] sm:$0xff] %vm1170_vm0, %v1573_v10  ;;  %v1544_v34 = vmul.f32 %v3170_v61, %v1513_v35  ;;  %1922 = vrsqrt.f32 %v1466_v43  ;;  %v1441_v53 = vmul.f32 0.03125, %v1414_v6 }
 0x2a2   : > { %v1913_v52 = vpop.eup %1912  ;;  %v1467_v28 = vadd.f32 1e-05, %v1440_v55  ;;  %1601 = vst.msk [vmem:[%s3184_s12 + $0x80] sm:$0xff] %vm1170_vm0, %v1574_v50  ;;  %v1545_v30 = vmul.f32 %v3170_v61, %v1514_v46 }
 0x2a3   : > { %v1575_v44 = vadd.f32 %v3178_v0, %v1544_v34  ;;  %v1515_v33 = vmul.f32 %v1913_v52, %v3115_v7  ;;  %v1915_v5 = vpop.eup %1914  ;;  %v1468_v36 = vadd.f32 1e-05, %v1441_v53 }
 0x2a4   : > { %1924 = vrsqrt.f32 %v1467_v28  ;;  %v1576_v24 = vadd.f32 %v3178_v0, %v1545_v30  ;;  %v1516_v62 = vmul.f32 %v1915_v5, %v3121_v29 }
 0x2a5   : > { %1602 = vst.msk [vmem:[%s3184_s12 + $0x88] sm:$0xff] %vm1170_vm0, %v1575_v44  ;;  %v1546_v27 = vmul.f32 %v3170_v61, %v1515_v33  ;;  %1926 = vrsqrt.f32 %v1468_v36 }
 0x2a6   : > { %v1917_v60 = vpop.eup %1916  ;;  %1603 = vst.msk [vmem:[%s3184_s12 + $0x90] sm:$0xff] %vm1170_vm0, %v1576_v24  ;;  %v1547_v7 = vmul.f32 %v3170_v61, %v1516_v62 }
 0x2a7   : > { %v1577_v1 = vadd.f32 %v3178_v0, %v1546_v27  ;;  %v1517_v48 = vmul.f32 %v1917_v60, %v3127_v17  ;;  %v1919_v11 = vpop.eup %1918 }
 0x2a8   : > { %v1578_v54 = vadd.f32 %v3178_v0, %v1547_v7  ;;  %v1518_v29 = vmul.f32 %v1919_v11, %v3133_v21 }
 0x2a9   : > { %1604 = vst.msk [vmem:[%s3184_s12 + $0x98] sm:$0xff] %vm1170_vm0, %v1577_v1  ;;  %v1548_v14 = vmul.f32 %v3170_v61, %v1517_v48 }
 0x2aa   : > { %v1921_v49 = vpop.eup %1920  ;;  %1605 = vst.msk [vmem:[%s3184_s12 + $0xa0] sm:$0xff] %vm1170_vm0, %v1578_v54  ;;  %v1549_v8 = vmul.f32 %v3170_v61, %v1518_v29 }
 0x2ab   : > { %v1579_v45 = vadd.f32 %v3178_v0, %v1548_v14  ;;  %v1519_v17 = vmul.f32 %v1921_v49, %v3139_v26  ;;  %v1923_v12 = vpop.eup %1922 }
 0x2ac   : > { %v1580_v47 = vadd.f32 %v3178_v0, %v1549_v8  ;;  %v1520_v21 = vmul.f32 %v1923_v12, %v3145_v41 }
 0x2ad   : > { %1606 = vst.msk [vmem:[%s3184_s12 + $0xa8] sm:$0xff] %vm1170_vm0, %v1579_v45  ;;  %v1550_v16 = vmul.f32 %v3170_v61, %v1519_v17 }
 0x2ae   : > { %v1925_v39 = vpop.eup %1924  ;;  %1607 = vst.msk [vmem:[%s3184_s12 + $0xb0] sm:$0xff] %vm1170_vm0, %v1580_v47  ;;  %v1551_v18 = vmul.f32 %v3170_v61, %v1520_v21 }
 0x2af   : > { %v1581_v26 = vadd.f32 %v3178_v0, %v1550_v16  ;;  %v1521_v19 = vmul.f32 %v1925_v39, %v3151_v13  ;;  %v1927_v25 = vpop.eup %1926 }
 0x2b0   : > { %v1582_v40 = vadd.f32 %v3178_v0, %v1551_v18  ;;  %v1522_v41 = vmul.f32 %v1927_v25, %v3157_v31 }
 0x2b1   : > { %1608 = vst.msk [vmem:[%s3184_s12 + $0xb8] sm:$0xff] %vm1170_vm0, %v1581_v26  ;;  %v1552_v42 = vmul.f32 %v3170_v61, %v1521_v19 }
 0x2b2   : > { %1609 = vst.msk [vmem:[%s3184_s12 + $0xc0] sm:$0xff] %vm1170_vm0, %v1582_v40  ;;  %v1553_v9 = vmul.f32 %v3170_v61, %v1522_v41 }
 0x2b3   : > { %v1583_v4 = vadd.f32 %v3178_v0, %v1552_v42 }
 0x2b4   : > { %v1584_v13 = vadd.f32 %v3178_v0, %v1553_v9 }
 0x2b5   : > { %1610 = vst.msk [vmem:[%s3184_s12 + $0xc8] sm:$0xff] %vm1170_vm0, %v1583_v4 }
 0x2b6   : > { %1611 = vst.msk [vmem:[%s3184_s12 + $0xd0] sm:$0xff] %vm1170_vm0, %v1584_v13 }
 0x2b7   : > { %1941 = shalt.err (!%p1938_p5)
}
 0x2b8   : > { %s1942_s29 = scalar_lea.hbm %s3321_s18, 3456  ;;  %s1946_s9 = scalar_lea.hbm %s3377_s4, 6912 }
 0x2b9   : > { %p1943_p6 = scmp.ne.s32.totalorder %s3321_s18, %s1942_s29  ;;  %p1947_p10 = scmp.lt.u32.totalorder %s3321_s18, %s3377_s4 }
 0x2ba   : > { %p1948_p11 = scmp.lt.u32.totalorder %s1946_s9, %s1942_s29  ;;  %p1950_p13 = scmp.lt.u32.totalorder %s1942_s29, %s3321_s18 }
 0x2bb   : > { %p1944_p7 = pnand %p1943_p6, %p2079_p4 }
 0x2bc   : > { %p1949_p12 = por %p1948_p11, %p1947_p10 }
 0x2bd   : > { %p1945_p9 = pneg %p1944_p7 }
 0x2be   : > { %p1951_p0 = por %p1950_p13, %p1949_p12 }
 0x2c0   : > { %p1952_p1 = pnand %p1951_p0, %p1945_p9 }
 0x2c2   : > { %1955 = shalt.err (!%p1952_p1)
}
 0x2c3   : > { %s2012_s12 = smov 128   ;;  %s2013_s13 = smov 8  }
 0x2c4   : > { %1754 = dma.vmem_to_hbm [thread:$0]  (%p2079_p4), %s3313_s14, 3456, %s3321_s18, %s3327_s24, %s2012_s12, %s2012_s12, %s2013_s13  }
 0x2c5 PF: > { %p1760_p2 = scmp.ge.s32.totalorder %s2006_s20, 2  ;;  %s1643_s21 = sand.u32 1, %s1986_s15  }
 0x2c6   : > { %s1644_s22 = scalar_lea.sflag [#allocation3], %s1643_s21 }
 0x2c7   : > { %p1757_p3 = pnand %p1760_p2, %p2086_p8 }
 0x2c9   : > { %1981 = dma.done.wait (!%p1757_p3), %s1644_s22, 3456  }
 0x2ca   : > { %1983 = vsyncadd (!%p1757_p3), %s1644_s22, 4294963840  ;;  %s17_s20 = sadd.s32 1, %s2006_s20   ;;  %s3380_s15 = smov %s1990_s16 }
 0x2cb   : > { %p14_p5 = scmp.ge.s32.totalorder %s17_s20, 4   ;;  %s3381_s16 = smov %s1994_s17 }
 0x2cc   : > { %s3382_s17 = smov %s2092_s28  ;;  %s3383_s18 = smov %s2002_s19 }
 0x2cd   : > { %s3384_s19 = smov %s3386_s23  ;;  %16 = sbr.rel (!%p14_p5) target bundleno = 4 (0x4), region = 77 }
 0x2d4   :  { %1649 = vsyncpa [#allocation3], 1 }
 0x2d5   :  { %1651 = vsyncpa [#allocation3 + $0x1], 1 }

</bundles_post_ra>
